<compile_context>
chip_gen: v7x
topology: tpu7x:2x2x1
jax: 0.10.0
libtpu: 0.0.40
codegen_flags: <defaults>
</compile_context>

<pallas_src>
import functools

import jax
import jax.numpy as jnp
from jax.experimental import pallas as pl
from jax.experimental.pallas import tpu as pltpu

KSIZE = 7
PAD = (KSIZE - 1) // 2  # 3
BN_EPS = 1e-5


def _spatial_gate_kernel(x_ref, w_ref, b_ref, cmask_ref, rmask_ref, o_ref, *, W):
    # x_ref block: (nb, C, L=H*W) in VMEM (lane-dense last dim).
    # w_ref: (98,) SMEM (BN-folded conv weights, idx = c*49 + ky*7 + kx).
    # b_ref: (1,) SMEM (BN-folded bias).
    # cmask_ref / rmask_ref: (7, L) VMEM {0,1} column/row validity per tap.
    nb, C, L = x_ref.shape

    x = x_ref[...]
    xf = x.astype(jnp.float32)             # f32 compute (v5e: no bf16 VALU/EUP)

    # ---- ChannelPool: channel-wise max and mean over C -> (nb, L) each ----
    cmax = xf[:, 0, :]
    csum = xf[:, 0, :]
    for c in range(1, C):
        xc = xf[:, c, :]
        cmax = jnp.maximum(cmax, xc)
        csum = csum + xc
    cmean = csum * (1.0 / C)

    cmask = cmask_ref[...]                  # (7, L)
    rmask = rmask_ref[...]                  # (7, L)

    # ---- hoisted lane (kx) shifts: 7 taps x 2 pooled channels = 14 rolls ----
    sh_max, sh_mean = [], []
    for kx in range(KSIZE):
        dx = kx - PAD
        if dx == 0:
            sh_max.append(cmax)
            sh_mean.append(cmean)
        else:
            shift = (-dx) % L               # value at (h, w+dx) lands at (h, w)
            m = cmask[kx:kx + 1, :]         # zero where w+dx is outside the image
            sh_max.append(pltpu.roll(cmax, shift, axis=1) * m)
            sh_mean.append(pltpu.roll(cmean, shift, axis=1) * m)

    # ---- 7x7 conv (2 -> 1 ch): per-ky row roll of the kx-accumulated sum ----
    acc = jnp.zeros((nb, L), jnp.float32)
    for ky in range(KSIZE):
        dy = ky - PAD
        tmp = jnp.zeros((nb, L), jnp.float32)
        for kx in range(KSIZE):
            w0 = w_ref[ky * KSIZE + kx]                    # max-pool channel tap
            w1 = w_ref[KSIZE * KSIZE + ky * KSIZE + kx]    # mean-pool channel tap
            tmp = tmp + w0 * sh_max[kx] + w1 * sh_mean[kx]
        if dy == 0:
            acc = acc + tmp
        else:
            shift = (-dy * W) % L           # row h+dy lands at row h (flat layout)
            acc = acc + pltpu.roll(tmp, shift, axis=1) * rmask[ky:ky + 1, :]

    # ---- folded BN bias + ReLU + sigmoid (EUP tanh form) + gating multiply ----
    y = jnp.maximum(acc + b_ref[0], 0.0)            # ReLU (ConvBlock activation)
    scale = 0.5 * (jnp.tanh(0.5 * y) + 1.0)         # == sigmoid(y), divide-free
    o_ref[...] = (xf * scale[:, None, :]).astype(o_ref.dtype)


def spatial_gate(x, conv_w, bn_gamma, bn_beta, bn_mean, bn_var,
                 *, block_bytes_target=1 << 20):
    """x: (N, C, H, W) float; conv_w: (1, 2, 7, 7) float32."""
    N, C, H, W = x.shape
    L = H * W

    # Fold inference-mode BatchNorm into conv weight scale + bias scalar.
    bn_scale = bn_gamma / jnp.sqrt(bn_var + BN_EPS)       # (1,)
    bn_bias = bn_beta - bn_mean * bn_scale                # (1,)
    w_eff = conv_w * bn_scale.reshape(-1, 1, 1, 1)        # (1, 2, 7, 7)
    w_flat = w_eff.reshape(-1).astype(jnp.float32)        # (98,)
    b_flat = bn_bias.astype(jnp.float32)                  # (1,)

    # Host-precomputed border masks for the flat (H*W) spatial layout.
    col = jnp.arange(L, dtype=jnp.int32) % W
    row = jnp.arange(L, dtype=jnp.int32) // W
    col_mask = jnp.stack(
        [((col + dx >= 0) & (col + dx < W)).astype(jnp.float32)
         for dx in range(-PAD, PAD + 1)])                 # (7, L)
    row_mask = jnp.stack(
        [((row + dy >= 0) & (row + dy < H)).astype(jnp.float32)
         for dy in range(-PAD, PAD + 1)])                 # (7, L)

    # Images per block: big enough to amortize per-step overhead (~0.35us),
    # small enough for double-buffered VMEM, keep >=2 parallel grid steps.
    bytes_per_img = C * L * x.dtype.itemsize
    nb = max(1, min(N, block_bytes_target // max(bytes_per_img, 1)))
    if N >= 2:
        nb = min(nb, max(1, N // 2))       # >=2 parallel steps (v7x dual-TC)
    while N % nb:
        nb -= 1

    x2 = x.reshape(N, C, L)                # free reshape -> lane-dense last dim

    kernel = functools.partial(_spatial_gate_kernel, W=W)
    out = pl.pallas_call(
        kernel,
        out_shape=jax.ShapeDtypeStruct((N, C, L), x.dtype),
        grid_spec=pltpu.PrefetchScalarGridSpec(
            num_scalar_prefetch=0,
            grid=(N // nb,),
            in_specs=[
                pl.BlockSpec((nb, C, L), lambda n: (n, 0, 0)),
                pl.BlockSpec(memory_space=pltpu.MemorySpace.SMEM),
                pl.BlockSpec(memory_space=pltpu.MemorySpace.SMEM),
                pl.BlockSpec((KSIZE, L), lambda n: (0, 0)),
                pl.BlockSpec((KSIZE, L), lambda n: (0, 0)),
            ],
            out_specs=pl.BlockSpec((nb, C, L), lambda n: (n, 0, 0)),
        ),
        compiler_params=pltpu.CompilerParams(
            dimension_semantics=("parallel",),
            vmem_limit_bytes=32 * 1024 * 1024,
        ),
    )(x2, w_flat, b_flat, col_mask, row_mask)
    return out.reshape(N, C, H, W)


def spatial_gate_reference(x, conv_w, bn_gamma, bn_beta, bn_mean, bn_var):
    """Pure-JAX reference for validation."""
    cmax = jnp.max(x, axis=1, keepdims=True)
    cmean = jnp.mean(x, axis=1, keepdims=True)
    xc = jnp.concatenate([cmax, cmean], axis=1)           # (N, 2, H, W)
    y = jax.lax.conv_general_dilated(
        xc, conv_w, window_strides=(1, 1),
        padding=[(PAD, PAD), (PAD, PAD)],
        dimension_numbers=("NCHW", "OIHW", "NCHW"))
    g = bn_gamma.reshape(1, -1, 1, 1)
    b = bn_beta.reshape(1, -1, 1, 1)
    m = bn_mean.reshape(1, -1, 1, 1)
    v = bn_var.reshape(1, -1, 1, 1)
    y = (y - m) / jnp.sqrt(v + BN_EPS) * g + b
    y = jnp.maximum(y, 0.0)
    return x * jax.nn.sigmoid(y)


if __name__ == "__main__":
    key = jax.random.PRNGKey(0)
    k_x, k_w = jax.random.split(key)

    N, C, H, W = 2, 4, 16, 16
    x = jax.random.normal(k_x, (N, C, H, W), dtype=jnp.float32)

    # Deterministic synthetic parameters (shapes from SpatialGate.__init__):
    #   Conv2d(in_ch=2, out_ch=1, kernel_size=7, bias=False) -> weight (1, 2, 7, 7)
    #   BatchNorm2d(1) default params / running stats.
    conv_w = 0.05 * jax.random.normal(k_w, (1, 2, KSIZE, KSIZE), dtype=jnp.float32)
    bn_gamma = jnp.ones((1,), jnp.float32)
    bn_beta = jnp.zeros((1,), jnp.float32)
    bn_mean = jnp.zeros((1,), jnp.float32)
    bn_var = jnp.ones((1,), jnp.float32)

    out = spatial_gate(x, conv_w, bn_gamma, bn_beta, bn_mean, bn_var)
    out = jax.block_until_ready(out)

    ref = spatial_gate_reference(x, conv_w, bn_gamma, bn_beta, bn_mean, bn_var)
    assert out.shape == ref.shape and out.dtype == ref.dtype
    max_err = float(jnp.max(jnp.abs(out - ref)))
    assert jnp.allclose(out, ref, atol=1e-4, rtol=1e-4), f"max_err={max_err}"

    print("KERNEL_OK")
</pallas_src>

<mosaic_0001>
module attributes {stable_mosaic.version = 11 : i64} {
  func.func @_spatial_gate_kernel(%arg0: i32, %arg1: memref<1x4x256xf32, #tpu.memory_space<vmem>>, %arg2: memref<98xf32, #tpu.memory_space<smem>>, %arg3: memref<1xf32, #tpu.memory_space<smem>>, %arg4: memref<7x256xf32, #tpu.memory_space<vmem>>, %arg5: memref<7x256xf32, #tpu.memory_space<vmem>>, %arg6: memref<1x4x256xf32, #tpu.memory_space<vmem>>) attributes {dimension_semantics = [#tpu.dimension_semantics<parallel>], iteration_bounds = array<i64: 2>, scalar_prefetch = 0 : i64, scratch_operands = 0 : i64, tpu.core_type = #tpu.core_type<tc>, window_params = [{transform_indices = @transform_0, window_bounds = array<i64: 1, 4, 256>}, {transform_indices = @transform_1, window_bounds = array<i64: 98>}, {transform_indices = @transform_2, window_bounds = array<i64: 1>}, {pipeline_mode = #tpu.pipeline_mode<synchronous>, transform_indices = @transform_3, window_bounds = array<i64: 7, 256>}, {pipeline_mode = #tpu.pipeline_mode<synchronous>, transform_indices = @transform_4, window_bounds = array<i64: 7, 256>}, {transform_indices = @transform_5, window_bounds = array<i64: 1, 4, 256>}]} {
    %c0 = arith.constant 0 : index
    %c0_0 = arith.constant 0 : index
    %c0_1 = arith.constant 0 : index
    %0 = vector.load %arg1[%c0, %c0_0, %c0_1] : memref<1x4x256xf32, #tpu.memory_space<vmem>>, vector<1x4x256xf32>
    %1 = vector.extract_strided_slice %0 {offsets = [0, 0, 0], sizes = [1, 1, 256], strides = [1, 1, 1]} : vector<1x4x256xf32> to vector<1x1x256xf32>
    %2 = vector.shape_cast %1 : vector<1x1x256xf32> to vector<1x256xf32>
    %3 = vector.extract_strided_slice %0 {offsets = [0, 0, 0], sizes = [1, 1, 256], strides = [1, 1, 1]} : vector<1x4x256xf32> to vector<1x1x256xf32>
    %4 = vector.shape_cast %3 : vector<1x1x256xf32> to vector<1x256xf32>
    %5 = vector.extract_strided_slice %0 {offsets = [0, 1, 0], sizes = [1, 1, 256], strides = [1, 1, 1]} : vector<1x4x256xf32> to vector<1x1x256xf32>
    %6 = vector.shape_cast %5 : vector<1x1x256xf32> to vector<1x256xf32>
    %7 = arith.maximumf %2, %6 : vector<1x256xf32>
    %8 = arith.addf %4, %6 : vector<1x256xf32>
    %9 = vector.extract_strided_slice %0 {offsets = [0, 2, 0], sizes = [1, 1, 256], strides = [1, 1, 1]} : vector<1x4x256xf32> to vector<1x1x256xf32>
    %10 = vector.shape_cast %9 : vector<1x1x256xf32> to vector<1x256xf32>
    %11 = arith.maximumf %7, %10 : vector<1x256xf32>
    %12 = arith.addf %8, %10 : vector<1x256xf32>
    %13 = vector.extract_strided_slice %0 {offsets = [0, 3, 0], sizes = [1, 1, 256], strides = [1, 1, 1]} : vector<1x4x256xf32> to vector<1x1x256xf32>
    %14 = vector.shape_cast %13 : vector<1x1x256xf32> to vector<1x256xf32>
    %15 = arith.maximumf %11, %14 : vector<1x256xf32>
    %16 = arith.addf %12, %14 : vector<1x256xf32>
    %cst = arith.constant 2.500000e-01 : f32
    %17 = vector.broadcast %cst : f32 to vector<1x256xf32>
    %18 = arith.mulf %16, %17 : vector<1x256xf32>
    %c0_2 = arith.constant 0 : index
    %c0_3 = arith.constant 0 : index
    %19 = vector.load %arg4[%c0_2, %c0_3] : memref<7x256xf32, #tpu.memory_space<vmem>>, vector<7x256xf32>
    %c0_4 = arith.constant 0 : index
    %c0_5 = arith.constant 0 : index
    %20 = vector.load %arg5[%c0_4, %c0_5] : memref<7x256xf32, #tpu.memory_space<vmem>>, vector<7x256xf32>
    %21 = vector.extract_strided_slice %19 {offsets = [0, 0], sizes = [1, 256], strides = [1, 1]} : vector<7x256xf32> to vector<1x256xf32>
    %c3_i32 = arith.constant 3 : i32
    %22 = tpu.dynamic_rotate %15 by %c3_i32 dim 1 : vector<1x256xf32>, i32 -> vector<1x256xf32>
    %23 = arith.mulf %22, %21 : vector<1x256xf32>
    %c3_i32_6 = arith.constant 3 : i32
    %24 = tpu.dynamic_rotate %18 by %c3_i32_6 dim 1 : vector<1x256xf32>, i32 -> vector<1x256xf32>
    %25 = arith.mulf %24, %21 : vector<1x256xf32>
    %26 = vector.extract_strided_slice %19 {offsets = [1, 0], sizes = [1, 256], strides = [1, 1]} : vector<7x256xf32> to vector<1x256xf32>
    %c2_i32 = arith.constant 2 : i32
    %27 = tpu.dynamic_rotate %15 by %c2_i32 dim 1 : vector<1x256xf32>, i32 -> vector<1x256xf32>
    %28 = arith.mulf %27, %26 : vector<1x256xf32>
    %c2_i32_7 = arith.constant 2 : i32
    %29 = tpu.dynamic_rotate %18 by %c2_i32_7 dim 1 : vector<1x256xf32>, i32 -> vector<1x256xf32>
    %30 = arith.mulf %29, %26 : vector<1x256xf32>
    %31 = vector.extract_strided_slice %19 {offsets = [2, 0], sizes = [1, 256], strides = [1, 1]} : vector<7x256xf32> to vector<1x256xf32>
    %c1_i32 = arith.constant 1 : i32
    %32 = tpu.dynamic_rotate %15 by %c1_i32 dim 1 : vector<1x256xf32>, i32 -> vector<1x256xf32>
    %33 = arith.mulf %32, %31 : vector<1x256xf32>
    %c1_i32_8 = arith.constant 1 : i32
    %34 = tpu.dynamic_rotate %18 by %c1_i32_8 dim 1 : vector<1x256xf32>, i32 -> vector<1x256xf32>
    %35 = arith.mulf %34, %31 : vector<1x256xf32>
    %36 = vector.extract_strided_slice %19 {offsets = [4, 0], sizes = [1, 256], strides = [1, 1]} : vector<7x256xf32> to vector<1x256xf32>
    %c255_i32 = arith.constant 255 : i32
    %37 = tpu.dynamic_rotate %15 by %c255_i32 dim 1 : vector<1x256xf32>, i32 -> vector<1x256xf32>
    %38 = arith.mulf %37, %36 : vector<1x256xf32>
    %c255_i32_9 = arith.constant 255 : i32
    %39 = tpu.dynamic_rotate %18 by %c255_i32_9 dim 1 : vector<1x256xf32>, i32 -> vector<1x256xf32>
    %40 = arith.mulf %39, %36 : vector<1x256xf32>
    %41 = vector.extract_strided_slice %19 {offsets = [5, 0], sizes = [1, 256], strides = [1, 1]} : vector<7x256xf32> to vector<1x256xf32>
    %c254_i32 = arith.constant 254 : i32
    %42 = tpu.dynamic_rotate %15 by %c254_i32 dim 1 : vector<1x256xf32>, i32 -> vector<1x256xf32>
    %43 = arith.mulf %42, %41 : vector<1x256xf32>
    %c254_i32_10 = arith.constant 254 : i32
    %44 = tpu.dynamic_rotate %18 by %c254_i32_10 dim 1 : vector<1x256xf32>, i32 -> vector<1x256xf32>
    %45 = arith.mulf %44, %41 : vector<1x256xf32>
    %46 = vector.extract_strided_slice %19 {offsets = [6, 0], sizes = [1, 256], strides = [1, 1]} : vector<7x256xf32> to vector<1x256xf32>
    %c253_i32 = arith.constant 253 : i32
    %47 = tpu.dynamic_rotate %15 by %c253_i32 dim 1 : vector<1x256xf32>, i32 -> vector<1x256xf32>
    %48 = arith.mulf %47, %46 : vector<1x256xf32>
    %c253_i32_11 = arith.constant 253 : i32
    %49 = tpu.dynamic_rotate %18 by %c253_i32_11 dim 1 : vector<1x256xf32>, i32 -> vector<1x256xf32>
    %50 = arith.mulf %49, %46 : vector<1x256xf32>
    %cst_12 = arith.constant 0.000000e+00 : f32
    %51 = vector.broadcast %cst_12 : f32 to vector<1x256xf32>
    %cst_13 = arith.constant 0.000000e+00 : f32
    %52 = vector.broadcast %cst_13 : f32 to vector<1x256xf32>
    %c0_14 = arith.constant 0 : index
    %53 = memref.load %arg2[%c0_14] : memref<98xf32, #tpu.memory_space<smem>>
    %c49 = arith.constant 49 : index
    %54 = memref.load %arg2[%c49] : memref<98xf32, #tpu.memory_space<smem>>
    %55 = vector.broadcast %53 : f32 to vector<1x256xf32>
    %56 = arith.mulf %55, %23 : vector<1x256xf32>
    %57 = arith.addf %52, %56 : vector<1x256xf32>
    %58 = vector.broadcast %54 : f32 to vector<1x256xf32>
    %59 = arith.mulf %58, %25 : vector<1x256xf32>
    %60 = arith.addf %57, %59 : vector<1x256xf32>
    %c1 = arith.constant 1 : index
    %61 = memref.load %arg2[%c1] : memref<98xf32, #tpu.memory_space<smem>>
    %c50 = arith.constant 50 : index
    %62 = memref.load %arg2[%c50] : memref<98xf32, #tpu.memory_space<smem>>
    %63 = vector.broadcast %61 : f32 to vector<1x256xf32>
    %64 = arith.mulf %63, %28 : vector<1x256xf32>
    %65 = arith.addf %60, %64 : vector<1x256xf32>
    %66 = vector.broadcast %62 : f32 to vector<1x256xf32>
    %67 = arith.mulf %66, %30 : vector<1x256xf32>
    %68 = arith.addf %65, %67 : vector<1x256xf32>
    %c2 = arith.constant 2 : index
    %69 = memref.load %arg2[%c2] : memref<98xf32, #tpu.memory_space<smem>>
    %c51 = arith.constant 51 : index
    %70 = memref.load %arg2[%c51] : memref<98xf32, #tpu.memory_space<smem>>
    %71 = vector.broadcast %69 : f32 to vector<1x256xf32>
    %72 = arith.mulf %71, %33 : vector<1x256xf32>
    %73 = arith.addf %68, %72 : vector<1x256xf32>
    %74 = vector.broadcast %70 : f32 to vector<1x256xf32>
    %75 = arith.mulf %74, %35 : vector<1x256xf32>
    %76 = arith.addf %73, %75 : vector<1x256xf32>
    %c3 = arith.constant 3 : index
    %77 = memref.load %arg2[%c3] : memref<98xf32, #tpu.memory_space<smem>>
    %c52 = arith.constant 52 : index
    %78 = memref.load %arg2[%c52] : memref<98xf32, #tpu.memory_space<smem>>
    %79 = vector.broadcast %77 : f32 to vector<1x256xf32>
    %80 = arith.mulf %79, %15 : vector<1x256xf32>
    %81 = arith.addf %76, %80 : vector<1x256xf32>
    %82 = vector.broadcast %78 : f32 to vector<1x256xf32>
    %83 = arith.mulf %82, %18 : vector<1x256xf32>
    %84 = arith.addf %81, %83 : vector<1x256xf32>
    %c4 = arith.constant 4 : index
    %85 = memref.load %arg2[%c4] : memref<98xf32, #tpu.memory_space<smem>>
    %c53 = arith.constant 53 : index
    %86 = memref.load %arg2[%c53] : memref<98xf32, #tpu.memory_space<smem>>
    %87 = vector.broadcast %85 : f32 to vector<1x256xf32>
    %88 = arith.mulf %87, %38 : vector<1x256xf32>
    %89 = arith.addf %84, %88 : vector<1x256xf32>
    %90 = vector.broadcast %86 : f32 to vector<1x256xf32>
    %91 = arith.mulf %90, %40 : vector<1x256xf32>
    %92 = arith.addf %89, %91 : vector<1x256xf32>
    %c5 = arith.constant 5 : index
    %93 = memref.load %arg2[%c5] : memref<98xf32, #tpu.memory_space<smem>>
    %c54 = arith.constant 54 : index
    %94 = memref.load %arg2[%c54] : memref<98xf32, #tpu.memory_space<smem>>
    %95 = vector.broadcast %93 : f32 to vector<1x256xf32>
    %96 = arith.mulf %95, %43 : vector<1x256xf32>
    %97 = arith.addf %92, %96 : vector<1x256xf32>
    %98 = vector.broadcast %94 : f32 to vector<1x256xf32>
    %99 = arith.mulf %98, %45 : vector<1x256xf32>
    %100 = arith.addf %97, %99 : vector<1x256xf32>
    %c6 = arith.constant 6 : index
    %101 = memref.load %arg2[%c6] : memref<98xf32, #tpu.memory_space<smem>>
    %c55 = arith.constant 55 : index
    %102 = memref.load %arg2[%c55] : memref<98xf32, #tpu.memory_space<smem>>
    %103 = vector.broadcast %101 : f32 to vector<1x256xf32>
    %104 = arith.mulf %103, %48 : vector<1x256xf32>
    %105 = arith.addf %100, %104 : vector<1x256xf32>
    %106 = vector.broadcast %102 : f32 to vector<1x256xf32>
    %107 = arith.mulf %106, %50 : vector<1x256xf32>
    %108 = arith.addf %105, %107 : vector<1x256xf32>
    %c48_i32 = arith.constant 48 : i32
    %109 = tpu.dynamic_rotate %108 by %c48_i32 dim 1 : vector<1x256xf32>, i32 -> vector<1x256xf32>
    %110 = vector.extract_strided_slice %20 {offsets = [0, 0], sizes = [1, 256], strides = [1, 1]} : vector<7x256xf32> to vector<1x256xf32>
    %111 = arith.mulf %109, %110 : vector<1x256xf32>
    %112 = arith.addf %51, %111 : vector<1x256xf32>
    %cst_15 = arith.constant 0.000000e+00 : f32
    %113 = vector.broadcast %cst_15 : f32 to vector<1x256xf32>
    %c7 = arith.constant 7 : index
    %114 = memref.load %arg2[%c7] : memref<98xf32, #tpu.memory_space<smem>>
    %c56 = arith.constant 56 : index
    %115 = memref.load %arg2[%c56] : memref<98xf32, #tpu.memory_space<smem>>
    %116 = vector.broadcast %114 : f32 to vector<1x256xf32>
    %117 = arith.mulf %116, %23 : vector<1x256xf32>
    %118 = arith.addf %113, %117 : vector<1x256xf32>
    %119 = vector.broadcast %115 : f32 to vector<1x256xf32>
    %120 = arith.mulf %119, %25 : vector<1x256xf32>
    %121 = arith.addf %118, %120 : vector<1x256xf32>
    %c8 = arith.constant 8 : index
    %122 = memref.load %arg2[%c8] : memref<98xf32, #tpu.memory_space<smem>>
    %c57 = arith.constant 57 : index
    %123 = memref.load %arg2[%c57] : memref<98xf32, #tpu.memory_space<smem>>
    %124 = vector.broadcast %122 : f32 to vector<1x256xf32>
    %125 = arith.mulf %124, %28 : vector<1x256xf32>
    %126 = arith.addf %121, %125 : vector<1x256xf32>
    %127 = vector.broadcast %123 : f32 to vector<1x256xf32>
    %128 = arith.mulf %127, %30 : vector<1x256xf32>
    %129 = arith.addf %126, %128 : vector<1x256xf32>
    %c9 = arith.constant 9 : index
    %130 = memref.load %arg2[%c9] : memref<98xf32, #tpu.memory_space<smem>>
    %c58 = arith.constant 58 : index
    %131 = memref.load %arg2[%c58] : memref<98xf32, #tpu.memory_space<smem>>
    %132 = vector.broadcast %130 : f32 to vector<1x256xf32>
    %133 = arith.mulf %132, %33 : vector<1x256xf32>
    %134 = arith.addf %129, %133 : vector<1x256xf32>
    %135 = vector.broadcast %131 : f32 to vector<1x256xf32>
    %136 = arith.mulf %135, %35 : vector<1x256xf32>
    %137 = arith.addf %134, %136 : vector<1x256xf32>
    %c10 = arith.constant 10 : index
    %138 = memref.load %arg2[%c10] : memref<98xf32, #tpu.memory_space<smem>>
    %c59 = arith.constant 59 : index
    %139 = memref.load %arg2[%c59] : memref<98xf32, #tpu.memory_space<smem>>
    %140 = vector.broadcast %138 : f32 to vector<1x256xf32>
    %141 = arith.mulf %140, %15 : vector<1x256xf32>
    %142 = arith.addf %137, %141 : vector<1x256xf32>
    %143 = vector.broadcast %139 : f32 to vector<1x256xf32>
    %144 = arith.mulf %143, %18 : vector<1x256xf32>
    %145 = arith.addf %142, %144 : vector<1x256xf32>
    %c11 = arith.constant 11 : index
    %146 = memref.load %arg2[%c11] : memref<98xf32, #tpu.memory_space<smem>>
    %c60 = arith.constant 60 : index
    %147 = memref.load %arg2[%c60] : memref<98xf32, #tpu.memory_space<smem>>
    %148 = vector.broadcast %146 : f32 to vector<1x256xf32>
    %149 = arith.mulf %148, %38 : vector<1x256xf32>
    %150 = arith.addf %145, %149 : vector<1x256xf32>
    %151 = vector.broadcast %147 : f32 to vector<1x256xf32>
    %152 = arith.mulf %151, %40 : vector<1x256xf32>
    %153 = arith.addf %150, %152 : vector<1x256xf32>
    %c12 = arith.constant 12 : index
    %154 = memref.load %arg2[%c12] : memref<98xf32, #tpu.memory_space<smem>>
    %c61 = arith.constant 61 : index
    %155 = memref.load %arg2[%c61] : memref<98xf32, #tpu.memory_space<smem>>
    %156 = vector.broadcast %154 : f32 to vector<1x256xf32>
    %157 = arith.mulf %156, %43 : vector<1x256xf32>
    %158 = arith.addf %153, %157 : vector<1x256xf32>
    %159 = vector.broadcast %155 : f32 to vector<1x256xf32>
    %160 = arith.mulf %159, %45 : vector<1x256xf32>
    %161 = arith.addf %158, %160 : vector<1x256xf32>
    %c13 = arith.constant 13 : index
    %162 = memref.load %arg2[%c13] : memref<98xf32, #tpu.memory_space<smem>>
    %c62 = arith.constant 62 : index
    %163 = memref.load %arg2[%c62] : memref<98xf32, #tpu.memory_space<smem>>
    %164 = vector.broadcast %162 : f32 to vector<1x256xf32>
    %165 = arith.mulf %164, %48 : vector<1x256xf32>
    %166 = arith.addf %161, %165 : vector<1x256xf32>
    %167 = vector.broadcast %163 : f32 to vector<1x256xf32>
    %168 = arith.mulf %167, %50 : vector<1x256xf32>
    %169 = arith.addf %166, %168 : vector<1x256xf32>
    %c32_i32 = arith.constant 32 : i32
    %170 = tpu.dynamic_rotate %169 by %c32_i32 dim 1 : vector<1x256xf32>, i32 -> vector<1x256xf32>
    %171 = vector.extract_strided_slice %20 {offsets = [1, 0], sizes = [1, 256], strides = [1, 1]} : vector<7x256xf32> to vector<1x256xf32>
    %172 = arith.mulf %170, %171 : vector<1x256xf32>
    %173 = arith.addf %112, %172 : vector<1x256xf32>
    %cst_16 = arith.constant 0.000000e+00 : f32
    %174 = vector.broadcast %cst_16 : f32 to vector<1x256xf32>
    %c14 = arith.constant 14 : index
    %175 = memref.load %arg2[%c14] : memref<98xf32, #tpu.memory_space<smem>>
    %c63 = arith.constant 63 : index
    %176 = memref.load %arg2[%c63] : memref<98xf32, #tpu.memory_space<smem>>
    %177 = vector.broadcast %175 : f32 to vector<1x256xf32>
    %178 = arith.mulf %177, %23 : vector<1x256xf32>
    %179 = arith.addf %174, %178 : vector<1x256xf32>
    %180 = vector.broadcast %176 : f32 to vector<1x256xf32>
    %181 = arith.mulf %180, %25 : vector<1x256xf32>
    %182 = arith.addf %179, %181 : vector<1x256xf32>
    %c15 = arith.constant 15 : index
    %183 = memref.load %arg2[%c15] : memref<98xf32, #tpu.memory_space<smem>>
    %c64 = arith.constant 64 : index
    %184 = memref.load %arg2[%c64] : memref<98xf32, #tpu.memory_space<smem>>
    %185 = vector.broadcast %183 : f32 to vector<1x256xf32>
    %186 = arith.mulf %185, %28 : vector<1x256xf32>
    %187 = arith.addf %182, %186 : vector<1x256xf32>
    %188 = vector.broadcast %184 : f32 to vector<1x256xf32>
    %189 = arith.mulf %188, %30 : vector<1x256xf32>
    %190 = arith.addf %187, %189 : vector<1x256xf32>
    %c16 = arith.constant 16 : index
    %191 = memref.load %arg2[%c16] : memref<98xf32, #tpu.memory_space<smem>>
    %c65 = arith.constant 65 : index
    %192 = memref.load %arg2[%c65] : memref<98xf32, #tpu.memory_space<smem>>
    %193 = vector.broadcast %191 : f32 to vector<1x256xf32>
    %194 = arith.mulf %193, %33 : vector<1x256xf32>
    %195 = arith.addf %190, %194 : vector<1x256xf32>
    %196 = vector.broadcast %192 : f32 to vector<1x256xf32>
    %197 = arith.mulf %196, %35 : vector<1x256xf32>
    %198 = arith.addf %195, %197 : vector<1x256xf32>
    %c17 = arith.constant 17 : index
    %199 = memref.load %arg2[%c17] : memref<98xf32, #tpu.memory_space<smem>>
    %c66 = arith.constant 66 : index
    %200 = memref.load %arg2[%c66] : memref<98xf32, #tpu.memory_space<smem>>
    %201 = vector.broadcast %199 : f32 to vector<1x256xf32>
    %202 = arith.mulf %201, %15 : vector<1x256xf32>
    %203 = arith.addf %198, %202 : vector<1x256xf32>
    %204 = vector.broadcast %200 : f32 to vector<1x256xf32>
    %205 = arith.mulf %204, %18 : vector<1x256xf32>
    %206 = arith.addf %203, %205 : vector<1x256xf32>
    %c18 = arith.constant 18 : index
    %207 = memref.load %arg2[%c18] : memref<98xf32, #tpu.memory_space<smem>>
    %c67 = arith.constant 67 : index
    %208 = memref.load %arg2[%c67] : memref<98xf32, #tpu.memory_space<smem>>
    %209 = vector.broadcast %207 : f32 to vector<1x256xf32>
    %210 = arith.mulf %209, %38 : vector<1x256xf32>
    %211 = arith.addf %206, %210 : vector<1x256xf32>
    %212 = vector.broadcast %208 : f32 to vector<1x256xf32>
    %213 = arith.mulf %212, %40 : vector<1x256xf32>
    %214 = arith.addf %211, %213 : vector<1x256xf32>
    %c19 = arith.constant 19 : index
    %215 = memref.load %arg2[%c19] : memref<98xf32, #tpu.memory_space<smem>>
    %c68 = arith.constant 68 : index
    %216 = memref.load %arg2[%c68] : memref<98xf32, #tpu.memory_space<smem>>
    %217 = vector.broadcast %215 : f32 to vector<1x256xf32>
    %218 = arith.mulf %217, %43 : vector<1x256xf32>
    %219 = arith.addf %214, %218 : vector<1x256xf32>
    %220 = vector.broadcast %216 : f32 to vector<1x256xf32>
    %221 = arith.mulf %220, %45 : vector<1x256xf32>
    %222 = arith.addf %219, %221 : vector<1x256xf32>
    %c20 = arith.constant 20 : index
    %223 = memref.load %arg2[%c20] : memref<98xf32, #tpu.memory_space<smem>>
    %c69 = arith.constant 69 : index
    %224 = memref.load %arg2[%c69] : memref<98xf32, #tpu.memory_space<smem>>
    %225 = vector.broadcast %223 : f32 to vector<1x256xf32>
    %226 = arith.mulf %225, %48 : vector<1x256xf32>
    %227 = arith.addf %222, %226 : vector<1x256xf32>
    %228 = vector.broadcast %224 : f32 to vector<1x256xf32>
    %229 = arith.mulf %228, %50 : vector<1x256xf32>
    %230 = arith.addf %227, %229 : vector<1x256xf32>
    %c16_i32 = arith.constant 16 : i32
    %231 = tpu.dynamic_rotate %230 by %c16_i32 dim 1 : vector<1x256xf32>, i32 -> vector<1x256xf32>
    %232 = vector.extract_strided_slice %20 {offsets = [2, 0], sizes = [1, 256], strides = [1, 1]} : vector<7x256xf32> to vector<1x256xf32>
    %233 = arith.mulf %231, %232 : vector<1x256xf32>
    %234 = arith.addf %173, %233 : vector<1x256xf32>
    %cst_17 = arith.constant 0.000000e+00 : f32
    %235 = vector.broadcast %cst_17 : f32 to vector<1x256xf32>
    %c21 = arith.constant 21 : index
    %236 = memref.load %arg2[%c21] : memref<98xf32, #tpu.memory_space<smem>>
    %c70 = arith.constant 70 : index
    %237 = memref.load %arg2[%c70] : memref<98xf32, #tpu.memory_space<smem>>
    %238 = vector.broadcast %236 : f32 to vector<1x256xf32>
    %239 = arith.mulf %238, %23 : vector<1x256xf32>
    %240 = arith.addf %235, %239 : vector<1x256xf32>
    %241 = vector.broadcast %237 : f32 to vector<1x256xf32>
    %242 = arith.mulf %241, %25 : vector<1x256xf32>
    %243 = arith.addf %240, %242 : vector<1x256xf32>
    %c22 = arith.constant 22 : index
    %244 = memref.load %arg2[%c22] : memref<98xf32, #tpu.memory_space<smem>>
    %c71 = arith.constant 71 : index
    %245 = memref.load %arg2[%c71] : memref<98xf32, #tpu.memory_space<smem>>
    %246 = vector.broadcast %244 : f32 to vector<1x256xf32>
    %247 = arith.mulf %246, %28 : vector<1x256xf32>
    %248 = arith.addf %243, %247 : vector<1x256xf32>
    %249 = vector.broadcast %245 : f32 to vector<1x256xf32>
    %250 = arith.mulf %249, %30 : vector<1x256xf32>
    %251 = arith.addf %248, %250 : vector<1x256xf32>
    %c23 = arith.constant 23 : index
    %252 = memref.load %arg2[%c23] : memref<98xf32, #tpu.memory_space<smem>>
    %c72 = arith.constant 72 : index
    %253 = memref.load %arg2[%c72] : memref<98xf32, #tpu.memory_space<smem>>
    %254 = vector.broadcast %252 : f32 to vector<1x256xf32>
    %255 = arith.mulf %254, %33 : vector<1x256xf32>
    %256 = arith.addf %251, %255 : vector<1x256xf32>
    %257 = vector.broadcast %253 : f32 to vector<1x256xf32>
    %258 = arith.mulf %257, %35 : vector<1x256xf32>
    %259 = arith.addf %256, %258 : vector<1x256xf32>
    %c24 = arith.constant 24 : index
    %260 = memref.load %arg2[%c24] : memref<98xf32, #tpu.memory_space<smem>>
    %c73 = arith.constant 73 : index
    %261 = memref.load %arg2[%c73] : memref<98xf32, #tpu.memory_space<smem>>
    %262 = vector.broadcast %260 : f32 to vector<1x256xf32>
    %263 = arith.mulf %262, %15 : vector<1x256xf32>
    %264 = arith.addf %259, %263 : vector<1x256xf32>
    %265 = vector.broadcast %261 : f32 to vector<1x256xf32>
    %266 = arith.mulf %265, %18 : vector<1x256xf32>
    %267 = arith.addf %264, %266 : vector<1x256xf32>
    %c25 = arith.constant 25 : index
    %268 = memref.load %arg2[%c25] : memref<98xf32, #tpu.memory_space<smem>>
    %c74 = arith.constant 74 : index
    %269 = memref.load %arg2[%c74] : memref<98xf32, #tpu.memory_space<smem>>
    %270 = vector.broadcast %268 : f32 to vector<1x256xf32>
    %271 = arith.mulf %270, %38 : vector<1x256xf32>
    %272 = arith.addf %267, %271 : vector<1x256xf32>
    %273 = vector.broadcast %269 : f32 to vector<1x256xf32>
    %274 = arith.mulf %273, %40 : vector<1x256xf32>
    %275 = arith.addf %272, %274 : vector<1x256xf32>
    %c26 = arith.constant 26 : index
    %276 = memref.load %arg2[%c26] : memref<98xf32, #tpu.memory_space<smem>>
    %c75 = arith.constant 75 : index
    %277 = memref.load %arg2[%c75] : memref<98xf32, #tpu.memory_space<smem>>
    %278 = vector.broadcast %276 : f32 to vector<1x256xf32>
    %279 = arith.mulf %278, %43 : vector<1x256xf32>
    %280 = arith.addf %275, %279 : vector<1x256xf32>
    %281 = vector.broadcast %277 : f32 to vector<1x256xf32>
    %282 = arith.mulf %281, %45 : vector<1x256xf32>
    %283 = arith.addf %280, %282 : vector<1x256xf32>
    %c27 = arith.constant 27 : index
    %284 = memref.load %arg2[%c27] : memref<98xf32, #tpu.memory_space<smem>>
    %c76 = arith.constant 76 : index
    %285 = memref.load %arg2[%c76] : memref<98xf32, #tpu.memory_space<smem>>
    %286 = vector.broadcast %284 : f32 to vector<1x256xf32>
    %287 = arith.mulf %286, %48 : vector<1x256xf32>
    %288 = arith.addf %283, %287 : vector<1x256xf32>
    %289 = vector.broadcast %285 : f32 to vector<1x256xf32>
    %290 = arith.mulf %289, %50 : vector<1x256xf32>
    %291 = arith.addf %288, %290 : vector<1x256xf32>
    %292 = arith.addf %234, %291 : vector<1x256xf32>
    %cst_18 = arith.constant 0.000000e+00 : f32
    %293 = vector.broadcast %cst_18 : f32 to vector<1x256xf32>
    %c28 = arith.constant 28 : index
    %294 = memref.load %arg2[%c28] : memref<98xf32, #tpu.memory_space<smem>>
    %c77 = arith.constant 77 : index
    %295 = memref.load %arg2[%c77] : memref<98xf32, #tpu.memory_space<smem>>
    %296 = vector.broadcast %294 : f32 to vector<1x256xf32>
    %297 = arith.mulf %296, %23 : vector<1x256xf32>
    %298 = arith.addf %293, %297 : vector<1x256xf32>
    %299 = vector.broadcast %295 : f32 to vector<1x256xf32>
    %300 = arith.mulf %299, %25 : vector<1x256xf32>
    %301 = arith.addf %298, %300 : vector<1x256xf32>
    %c29 = arith.constant 29 : index
    %302 = memref.load %arg2[%c29] : memref<98xf32, #tpu.memory_space<smem>>
    %c78 = arith.constant 78 : index
    %303 = memref.load %arg2[%c78] : memref<98xf32, #tpu.memory_space<smem>>
    %304 = vector.broadcast %302 : f32 to vector<1x256xf32>
    %305 = arith.mulf %304, %28 : vector<1x256xf32>
    %306 = arith.addf %301, %305 : vector<1x256xf32>
    %307 = vector.broadcast %303 : f32 to vector<1x256xf32>
    %308 = arith.mulf %307, %30 : vector<1x256xf32>
    %309 = arith.addf %306, %308 : vector<1x256xf32>
    %c30 = arith.constant 30 : index
    %310 = memref.load %arg2[%c30] : memref<98xf32, #tpu.memory_space<smem>>
    %c79 = arith.constant 79 : index
    %311 = memref.load %arg2[%c79] : memref<98xf32, #tpu.memory_space<smem>>
    %312 = vector.broadcast %310 : f32 to vector<1x256xf32>
    %313 = arith.mulf %312, %33 : vector<1x256xf32>
    %314 = arith.addf %309, %313 : vector<1x256xf32>
    %315 = vector.broadcast %311 : f32 to vector<1x256xf32>
    %316 = arith.mulf %315, %35 : vector<1x256xf32>
    %317 = arith.addf %314, %316 : vector<1x256xf32>
    %c31 = arith.constant 31 : index
    %318 = memref.load %arg2[%c31] : memref<98xf32, #tpu.memory_space<smem>>
    %c80 = arith.constant 80 : index
    %319 = memref.load %arg2[%c80] : memref<98xf32, #tpu.memory_space<smem>>
    %320 = vector.broadcast %318 : f32 to vector<1x256xf32>
    %321 = arith.mulf %320, %15 : vector<1x256xf32>
    %322 = arith.addf %317, %321 : vector<1x256xf32>
    %323 = vector.broadcast %319 : f32 to vector<1x256xf32>
    %324 = arith.mulf %323, %18 : vector<1x256xf32>
    %325 = arith.addf %322, %324 : vector<1x256xf32>
    %c32 = arith.constant 32 : index
    %326 = memref.load %arg2[%c32] : memref<98xf32, #tpu.memory_space<smem>>
    %c81 = arith.constant 81 : index
    %327 = memref.load %arg2[%c81] : memref<98xf32, #tpu.memory_space<smem>>
    %328 = vector.broadcast %326 : f32 to vector<1x256xf32>
    %329 = arith.mulf %328, %38 : vector<1x256xf32>
    %330 = arith.addf %325, %329 : vector<1x256xf32>
    %331 = vector.broadcast %327 : f32 to vector<1x256xf32>
    %332 = arith.mulf %331, %40 : vector<1x256xf32>
    %333 = arith.addf %330, %332 : vector<1x256xf32>
    %c33 = arith.constant 33 : index
    %334 = memref.load %arg2[%c33] : memref<98xf32, #tpu.memory_space<smem>>
    %c82 = arith.constant 82 : index
    %335 = memref.load %arg2[%c82] : memref<98xf32, #tpu.memory_space<smem>>
    %336 = vector.broadcast %334 : f32 to vector<1x256xf32>
    %337 = arith.mulf %336, %43 : vector<1x256xf32>
    %338 = arith.addf %333, %337 : vector<1x256xf32>
    %339 = vector.broadcast %335 : f32 to vector<1x256xf32>
    %340 = arith.mulf %339, %45 : vector<1x256xf32>
    %341 = arith.addf %338, %340 : vector<1x256xf32>
    %c34 = arith.constant 34 : index
    %342 = memref.load %arg2[%c34] : memref<98xf32, #tpu.memory_space<smem>>
    %c83 = arith.constant 83 : index
    %343 = memref.load %arg2[%c83] : memref<98xf32, #tpu.memory_space<smem>>
    %344 = vector.broadcast %342 : f32 to vector<1x256xf32>
    %345 = arith.mulf %344, %48 : vector<1x256xf32>
    %346 = arith.addf %341, %345 : vector<1x256xf32>
    %347 = vector.broadcast %343 : f32 to vector<1x256xf32>
    %348 = arith.mulf %347, %50 : vector<1x256xf32>
    %349 = arith.addf %346, %348 : vector<1x256xf32>
    %c240_i32 = arith.constant 240 : i32
    %350 = tpu.dynamic_rotate %349 by %c240_i32 dim 1 : vector<1x256xf32>, i32 -> vector<1x256xf32>
    %351 = vector.extract_strided_slice %20 {offsets = [4, 0], sizes = [1, 256], strides = [1, 1]} : vector<7x256xf32> to vector<1x256xf32>
    %352 = arith.mulf %350, %351 : vector<1x256xf32>
    %353 = arith.addf %292, %352 : vector<1x256xf32>
    %cst_19 = arith.constant 0.000000e+00 : f32
    %354 = vector.broadcast %cst_19 : f32 to vector<1x256xf32>
    %c35 = arith.constant 35 : index
    %355 = memref.load %arg2[%c35] : memref<98xf32, #tpu.memory_space<smem>>
    %c84 = arith.constant 84 : index
    %356 = memref.load %arg2[%c84] : memref<98xf32, #tpu.memory_space<smem>>
    %357 = vector.broadcast %355 : f32 to vector<1x256xf32>
    %358 = arith.mulf %357, %23 : vector<1x256xf32>
    %359 = arith.addf %354, %358 : vector<1x256xf32>
    %360 = vector.broadcast %356 : f32 to vector<1x256xf32>
    %361 = arith.mulf %360, %25 : vector<1x256xf32>
    %362 = arith.addf %359, %361 : vector<1x256xf32>
    %c36 = arith.constant 36 : index
    %363 = memref.load %arg2[%c36] : memref<98xf32, #tpu.memory_space<smem>>
    %c85 = arith.constant 85 : index
    %364 = memref.load %arg2[%c85] : memref<98xf32, #tpu.memory_space<smem>>
    %365 = vector.broadcast %363 : f32 to vector<1x256xf32>
    %366 = arith.mulf %365, %28 : vector<1x256xf32>
    %367 = arith.addf %362, %366 : vector<1x256xf32>
    %368 = vector.broadcast %364 : f32 to vector<1x256xf32>
    %369 = arith.mulf %368, %30 : vector<1x256xf32>
    %370 = arith.addf %367, %369 : vector<1x256xf32>
    %c37 = arith.constant 37 : index
    %371 = memref.load %arg2[%c37] : memref<98xf32, #tpu.memory_space<smem>>
    %c86 = arith.constant 86 : index
    %372 = memref.load %arg2[%c86] : memref<98xf32, #tpu.memory_space<smem>>
    %373 = vector.broadcast %371 : f32 to vector<1x256xf32>
    %374 = arith.mulf %373, %33 : vector<1x256xf32>
    %375 = arith.addf %370, %374 : vector<1x256xf32>
    %376 = vector.broadcast %372 : f32 to vector<1x256xf32>
    %377 = arith.mulf %376, %35 : vector<1x256xf32>
    %378 = arith.addf %375, %377 : vector<1x256xf32>
    %c38 = arith.constant 38 : index
    %379 = memref.load %arg2[%c38] : memref<98xf32, #tpu.memory_space<smem>>
    %c87 = arith.constant 87 : index
    %380 = memref.load %arg2[%c87] : memref<98xf32, #tpu.memory_space<smem>>
    %381 = vector.broadcast %379 : f32 to vector<1x256xf32>
    %382 = arith.mulf %381, %15 : vector<1x256xf32>
    %383 = arith.addf %378, %382 : vector<1x256xf32>
    %384 = vector.broadcast %380 : f32 to vector<1x256xf32>
    %385 = arith.mulf %384, %18 : vector<1x256xf32>
    %386 = arith.addf %383, %385 : vector<1x256xf32>
    %c39 = arith.constant 39 : index
    %387 = memref.load %arg2[%c39] : memref<98xf32, #tpu.memory_space<smem>>
    %c88 = arith.constant 88 : index
    %388 = memref.load %arg2[%c88] : memref<98xf32, #tpu.memory_space<smem>>
    %389 = vector.broadcast %387 : f32 to vector<1x256xf32>
    %390 = arith.mulf %389, %38 : vector<1x256xf32>
    %391 = arith.addf %386, %390 : vector<1x256xf32>
    %392 = vector.broadcast %388 : f32 to vector<1x256xf32>
    %393 = arith.mulf %392, %40 : vector<1x256xf32>
    %394 = arith.addf %391, %393 : vector<1x256xf32>
    %c40 = arith.constant 40 : index
    %395 = memref.load %arg2[%c40] : memref<98xf32, #tpu.memory_space<smem>>
    %c89 = arith.constant 89 : index
    %396 = memref.load %arg2[%c89] : memref<98xf32, #tpu.memory_space<smem>>
    %397 = vector.broadcast %395 : f32 to vector<1x256xf32>
    %398 = arith.mulf %397, %43 : vector<1x256xf32>
    %399 = arith.addf %394, %398 : vector<1x256xf32>
    %400 = vector.broadcast %396 : f32 to vector<1x256xf32>
    %401 = arith.mulf %400, %45 : vector<1x256xf32>
    %402 = arith.addf %399, %401 : vector<1x256xf32>
    %c41 = arith.constant 41 : index
    %403 = memref.load %arg2[%c41] : memref<98xf32, #tpu.memory_space<smem>>
    %c90 = arith.constant 90 : index
    %404 = memref.load %arg2[%c90] : memref<98xf32, #tpu.memory_space<smem>>
    %405 = vector.broadcast %403 : f32 to vector<1x256xf32>
    %406 = arith.mulf %405, %48 : vector<1x256xf32>
    %407 = arith.addf %402, %406 : vector<1x256xf32>
    %408 = vector.broadcast %404 : f32 to vector<1x256xf32>
    %409 = arith.mulf %408, %50 : vector<1x256xf32>
    %410 = arith.addf %407, %409 : vector<1x256xf32>
    %c224_i32 = arith.constant 224 : i32
    %411 = tpu.dynamic_rotate %410 by %c224_i32 dim 1 : vector<1x256xf32>, i32 -> vector<1x256xf32>
    %412 = vector.extract_strided_slice %20 {offsets = [5, 0], sizes = [1, 256], strides = [1, 1]} : vector<7x256xf32> to vector<1x256xf32>
    %413 = arith.mulf %411, %412 : vector<1x256xf32>
    %414 = arith.addf %353, %413 : vector<1x256xf32>
    %cst_20 = arith.constant 0.000000e+00 : f32
    %415 = vector.broadcast %cst_20 : f32 to vector<1x256xf32>
    %c42 = arith.constant 42 : index
    %416 = memref.load %arg2[%c42] : memref<98xf32, #tpu.memory_space<smem>>
    %c91 = arith.constant 91 : index
    %417 = memref.load %arg2[%c91] : memref<98xf32, #tpu.memory_space<smem>>
    %418 = vector.broadcast %416 : f32 to vector<1x256xf32>
    %419 = arith.mulf %418, %23 : vector<1x256xf32>
    %420 = arith.addf %415, %419 : vector<1x256xf32>
    %421 = vector.broadcast %417 : f32 to vector<1x256xf32>
    %422 = arith.mulf %421, %25 : vector<1x256xf32>
    %423 = arith.addf %420, %422 : vector<1x256xf32>
    %c43 = arith.constant 43 : index
    %424 = memref.load %arg2[%c43] : memref<98xf32, #tpu.memory_space<smem>>
    %c92 = arith.constant 92 : index
    %425 = memref.load %arg2[%c92] : memref<98xf32, #tpu.memory_space<smem>>
    %426 = vector.broadcast %424 : f32 to vector<1x256xf32>
    %427 = arith.mulf %426, %28 : vector<1x256xf32>
    %428 = arith.addf %423, %427 : vector<1x256xf32>
    %429 = vector.broadcast %425 : f32 to vector<1x256xf32>
    %430 = arith.mulf %429, %30 : vector<1x256xf32>
    %431 = arith.addf %428, %430 : vector<1x256xf32>
    %c44 = arith.constant 44 : index
    %432 = memref.load %arg2[%c44] : memref<98xf32, #tpu.memory_space<smem>>
    %c93 = arith.constant 93 : index
    %433 = memref.load %arg2[%c93] : memref<98xf32, #tpu.memory_space<smem>>
    %434 = vector.broadcast %432 : f32 to vector<1x256xf32>
    %435 = arith.mulf %434, %33 : vector<1x256xf32>
    %436 = arith.addf %431, %435 : vector<1x256xf32>
    %437 = vector.broadcast %433 : f32 to vector<1x256xf32>
    %438 = arith.mulf %437, %35 : vector<1x256xf32>
    %439 = arith.addf %436, %438 : vector<1x256xf32>
    %c45 = arith.constant 45 : index
    %440 = memref.load %arg2[%c45] : memref<98xf32, #tpu.memory_space<smem>>
    %c94 = arith.constant 94 : index
    %441 = memref.load %arg2[%c94] : memref<98xf32, #tpu.memory_space<smem>>
    %442 = vector.broadcast %440 : f32 to vector<1x256xf32>
    %443 = arith.mulf %442, %15 : vector<1x256xf32>
    %444 = arith.addf %439, %443 : vector<1x256xf32>
    %445 = vector.broadcast %441 : f32 to vector<1x256xf32>
    %446 = arith.mulf %445, %18 : vector<1x256xf32>
    %447 = arith.addf %444, %446 : vector<1x256xf32>
    %c46 = arith.constant 46 : index
    %448 = memref.load %arg2[%c46] : memref<98xf32, #tpu.memory_space<smem>>
    %c95 = arith.constant 95 : index
    %449 = memref.load %arg2[%c95] : memref<98xf32, #tpu.memory_space<smem>>
    %450 = vector.broadcast %448 : f32 to vector<1x256xf32>
    %451 = arith.mulf %450, %38 : vector<1x256xf32>
    %452 = arith.addf %447, %451 : vector<1x256xf32>
    %453 = vector.broadcast %449 : f32 to vector<1x256xf32>
    %454 = arith.mulf %453, %40 : vector<1x256xf32>
    %455 = arith.addf %452, %454 : vector<1x256xf32>
    %c47 = arith.constant 47 : index
    %456 = memref.load %arg2[%c47] : memref<98xf32, #tpu.memory_space<smem>>
    %c96 = arith.constant 96 : index
    %457 = memref.load %arg2[%c96] : memref<98xf32, #tpu.memory_space<smem>>
    %458 = vector.broadcast %456 : f32 to vector<1x256xf32>
    %459 = arith.mulf %458, %43 : vector<1x256xf32>
    %460 = arith.addf %455, %459 : vector<1x256xf32>
    %461 = vector.broadcast %457 : f32 to vector<1x256xf32>
    %462 = arith.mulf %461, %45 : vector<1x256xf32>
    %463 = arith.addf %460, %462 : vector<1x256xf32>
    %c48 = arith.constant 48 : index
    %464 = memref.load %arg2[%c48] : memref<98xf32, #tpu.memory_space<smem>>
    %c97 = arith.constant 97 : index
    %465 = memref.load %arg2[%c97] : memref<98xf32, #tpu.memory_space<smem>>
    %466 = vector.broadcast %464 : f32 to vector<1x256xf32>
    %467 = arith.mulf %466, %48 : vector<1x256xf32>
    %468 = arith.addf %463, %467 : vector<1x256xf32>
    %469 = vector.broadcast %465 : f32 to vector<1x256xf32>
    %470 = arith.mulf %469, %50 : vector<1x256xf32>
    %471 = arith.addf %468, %470 : vector<1x256xf32>
    %c208_i32 = arith.constant 208 : i32
    %472 = tpu.dynamic_rotate %471 by %c208_i32 dim 1 : vector<1x256xf32>, i32 -> vector<1x256xf32>
    %473 = vector.extract_strided_slice %20 {offsets = [6, 0], sizes = [1, 256], strides = [1, 1]} : vector<7x256xf32> to vector<1x256xf32>
    %474 = arith.mulf %472, %473 : vector<1x256xf32>
    %475 = arith.addf %414, %474 : vector<1x256xf32>
    %c0_21 = arith.constant 0 : index
    %476 = memref.load %arg3[%c0_21] : memref<1xf32, #tpu.memory_space<smem>>
    %477 = vector.broadcast %476 : f32 to vector<1x256xf32>
    %478 = arith.addf %475, %477 : vector<1x256xf32>
    %cst_22 = arith.constant 0.000000e+00 : f32
    %479 = vector.broadcast %cst_22 : f32 to vector<1x256xf32>
    %480 = arith.maximumf %478, %479 : vector<1x256xf32>
    %cst_23 = arith.constant 5.000000e-01 : f32
    %481 = vector.broadcast %cst_23 : f32 to vector<1x256xf32>
    %482 = arith.mulf %481, %480 : vector<1x256xf32>
    %483 = math.tanh %482 : vector<1x256xf32>
    %cst_24 = arith.constant 1.000000e+00 : f32
    %484 = vector.broadcast %cst_24 : f32 to vector<1x256xf32>
    %485 = arith.addf %483, %484 : vector<1x256xf32>
    %cst_25 = arith.constant 5.000000e-01 : f32
    %486 = vector.broadcast %cst_25 : f32 to vector<1x256xf32>
    %487 = arith.mulf %486, %485 : vector<1x256xf32>
    %488 = vector.shape_cast %487 : vector<1x256xf32> to vector<1x1x256xf32>
    %489 = vector.broadcast %488 : vector<1x1x256xf32> to vector<1x4x256xf32>
    %490 = arith.mulf %0, %489 : vector<1x4x256xf32>
    %c0_26 = arith.constant 0 : index
    %c0_27 = arith.constant 0 : index
    %c0_28 = arith.constant 0 : index
    %491 = vector.load %arg6[%c0_26, %c0_27, %c0_28] : memref<1x4x256xf32, #tpu.memory_space<vmem>>, vector<1x4x256xf32>
    tpu.vector_store %arg6[%c0_26, %c0_27, %c0_28], %490 {strides = array<i32>} : memref<1x4x256xf32, #tpu.memory_space<vmem>>, vector<1x4x256xf32>,
    return
  }
  func.func @transform_0(%arg0: i32) -> (i32, i32, i32) {
    %c0_i32 = arith.constant 0 : i32
    %c0_i32_0 = arith.constant 0 : i32
    %c0_i32_1 = arith.constant 0 : i32
    return %arg0, %c0_i32, %c0_i32_0 : i32, i32, i32
  }
  func.func @transform_1(%arg0: i32) -> i32 {
    %c0_i32 = arith.constant 0 : i32
    %c0_i32_0 = arith.constant 0 : i32
    return %c0_i32 : i32
  }
  func.func @transform_2(%arg0: i32) -> i32 {
    %c0_i32 = arith.constant 0 : i32
    %c0_i32_0 = arith.constant 0 : i32
    return %c0_i32 : i32
  }
  func.func @transform_3(%arg0: i32) -> (i32, i32) {
    %c0_i32 = arith.constant 0 : i32
    %c0_i32_0 = arith.constant 0 : i32
    %c0_i32_1 = arith.constant 0 : i32
    return %c0_i32, %c0_i32_0 : i32, i32
  }
  func.func @transform_4(%arg0: i32) -> (i32, i32) {
    %c0_i32 = arith.constant 0 : i32
    %c0_i32_0 = arith.constant 0 : i32
    %c0_i32_1 = arith.constant 0 : i32
    return %c0_i32, %c0_i32_0 : i32, i32
  }
  func.func @transform_5(%arg0: i32) -> (i32, i32, i32) {
    %c0_i32 = arith.constant 0 : i32
    %c0_i32_0 = arith.constant 0 : i32
    %c0_i32_1 = arith.constant 0 : i32
    return %arg0, %c0_i32, %c0_i32_0 : i32, i32, i32
  }
}

</mosaic_0001>

<bundles_post_ra>
// kernel: tpu_custom_call.1
= control target key start
LH: loop header
LB: loop body
LE: loop exit
PB: predicated region body
PF: predicated region fallthrough
CT: control target
= control target key end

     0   :  { %s3300_s0 = inlined_call_operand.hbm [shape: f32[2,4,256], index: 0, kind: input, shape index: {}]   ;;  %s3301_s1 = inlined_call_operand.vmem [shape: f32[98], index: 1, kind: input, shape index: {}]   ;;  %s3302_s2 = inlined_call_operand.<no memory space> [shape: f32[1], index: 2, kind: input, shape index: {}]   ;;  %s3303_s3 = inlined_call_operand.hbm [shape: f32[7,256], index: 3, kind: input, shape index: {}]   ;;  %s3304_s4 = inlined_call_operand.hbm [shape: f32[7,256], index: 4, kind: input, shape index: {}]   ;;  %s3305_s5 = inlined_call_operand.hbm [shape: f32[2,4,256], index: 5, kind: output, shape index: {}]  }
   0x1   :  { %3445 = sst [smem:[#allocation100_spill]] %s3300_s0 }
   0x2   :  { %3446 = sst [smem:[#allocation101_spill]] %s3301_s1 }
   0x3   :  { %3447 = sst [smem:[#allocation102_spill]] %s3303_s3 }
   0x4   :  { %3448 = sst [smem:[#allocation103_spill]] %s3304_s4 }
   0x5   :  { %3449 = sst [smem:[#allocation104_spill]] %s3305_s5 }
   0x6   :  { %10 = sst [smem:[#allocation2]] %s3302_s2 }
   0x7   :  { %11 = vsyncpa [#allocation4], 0 }
   0x8   :  { %13 = vsyncpa [#allocation4 + $0x1], 0 }
   0x9   :  { %14 = vsyncpa [#allocation6], 0 }
   0xa   :  { %15 = vsyncpa [#allocation9], 0 }
   0xb   :  { %16 = vsyncpa [#allocation5], 0 }
   0xc   :  { %18 = vsyncpa [#allocation5 + $0x1], 0  ;;  %s1853_s20 = smov 0   ;;  %s1855_s21 = smov 0  }
   0xd   :  { %s1857_s22 = smov 0   ;;  %s1859_s23 = smov 0  }
   0xe LB: > { %3450 = sst [smem:[#allocation16_spill]] %s1789_s20  ;;  %s1874_s2 = sadd.s32 4294967295, %s1801_s23   ;;  %s1801_s23 = sphi %s1859_s23, %s3814_s23   ;;  %s1797_s22 = sphi %s1857_s22, %s3817_s22   ;;  %s1793_s21 = sphi %s1855_s21, %s3816_s21   ;;  %s1789_s20 = sphi %s1853_s20, %s3815_s20  }
   0xf   : > { %3451 = sst [smem:[#allocation17_spill]] %s1793_s21  ;;  %s1413_s24 = sadd.s32 4294967294, %s1801_s23  }
  0x10   : > { %3452 = sst [smem:[#allocation18_spill]] %s1797_s22  ;;  %p44_p0 = scmp.ne.s32.totalorder %s1793_s21, %s1789_s20 }
  0x11   : > { %3453 = sst [smem:[#allocation19_spill]] %s1801_s23  ;;  %p3306_p1 = scmp.eq.s32.totalorder %s1874_s2, 0 }
  0x12   : > { %3454 = sst [smem:[#allocation20_spill]] %s1874_s2  ;;  %p158_p3 = scmp.eq.s32.totalorder %s1413_s24, 1 }
  0x13   : > { %p1883_p4 = por %p3306_p1, %p44_p0  ;;  %p1414_p5 = scmp.ge.s32.totalorder %s1801_s23, 1 }
  0x14   : > { %p1888_p6 = por %p158_p3, %p44_p0  ;;  %p165_p7 = scmp.lt.s32.totalorder %s1801_s23, 3 }
  0x15   : > { %s3455_s25 = scalar_select %p1883_p4, 1, 0 }
  0x16   : > { %s3456_s26 = scalar_select %p1888_p6, 1, 0 }
  0x17   : > { %p1893_p8 = pnand %p1414_p5, %p165_p7  ;;  %s1803_s28 = smov [#allocation8]  }
  0x18   : > { %3457 = sst [smem:[#allocation21_spill]] %s3456_s26  ;;  %s192_s29 = sshll.u32 %s1803_s28, 4  ;;  %s193_s29 = int_to_ptr.vmem [resolvable:$true] %s192_s29 }
  0x19   : > { %s3458_s27 = scalar_select %p1893_p8, 1, 0 }
  0x1a   : > { %p1548_p10 = pneg %p1893_p8  ;;  %s3459_s1 = sld [smem:[#allocation101_spill]] }
  0x1b   : > { %s1804_s9 = smov [#allocation10]   ;;  %s3461_s3 = sld [smem:[#allocation102_spill]] }
  0x1c   : > { %p1907_p11 = pnand %p1548_p10, %p3306_p1  ;;  %s203_s10 = sshll.u32 %s1804_s9, 4  ;;  %s1911_s10 = int_to_ptr.vmem [resolvable:$true] %s203_s10 }
  0x1e   : > { %p1921_p13 = pneg %p1907_p11 }
  0x20   : > { %s178_s7 = sshll.u32 %s3459_s1, 4  ;;  %s1903_s7 = int_to_ptr.vmem [resolvable:$true] %s178_s7 }
  0x21   : > { %s1626_s13 = scalar_lea.hbm %s3461_s3, 256 }
  0x22   : > { %p1627_p12 = scmp.ne.s32.totalorder %s3461_s3, %s1626_s13  ;;  %p1633_p5 = scmp.lt.u32.totalorder %s1626_s13, %s3461_s3 }
  0x24   : > { %p1629_p0 = pnand %p1921_p13, %p1627_p12 }
  0x26   : > { %p1630_p3 = pneg %p1629_p0 }
  0x28   : > { %p1635_p7 = pnand %p1633_p5, %p1630_p3 }
  0x2a   : > { %1638 = shalt.err (!%p1635_p7)
}
  0x2b   : > { %s1639_s19 = scalar_lea.vmem %s193_s29, 256  ;;  %p1647_p2 = scmp.lt.s32.totalorder %s193_s29, %s193_s29 }
  0x2c   : > { %p1640_p10 = scmp.ne.s32.totalorder %s193_s29, %s1639_s19  ;;  %p1648_p6 = scmp.lt.s32.totalorder %s1639_s19, %s1639_s19 }
  0x2e   : > { %p1642_p9 = pnand %p1640_p10, %p1921_p13  ;;  %p1649_p4 = por %p1648_p6, %p1647_p2 }
  0x30   : > { %p1643_p1 = pneg %p1642_p9 }
  0x32   : > { %p1650_p8 = pnand %p1649_p4, %p1643_p1 }
  0x34   : > { %1653 = shalt.err (!%p1650_p8)
}
  0x35   : > { %1554 = dma.hbm_to_vmem [thread:$0]  (!%p1907_p11), %s3461_s3, 256, %s193_s29, [#allocation9]  }
  0x36   : > { %s1654_s30 = scalar_lea.vmem %s1903_s7, 16  ;;  %p1662_p3 = scmp.lt.s32.totalorder %s1903_s7, %s1903_s7 }
  0x37   : > { %p1655_p12 = scmp.ne.s32.totalorder %s1903_s7, %s1654_s30  ;;  %p1663_p2 = scmp.lt.s32.totalorder %s1654_s30, %s1654_s30 }
  0x39   : > { %p1657_p0 = pnand %p1655_p12, %p1921_p13  ;;  %p1664_p1 = por %p1663_p2, %p1662_p3 }
  0x3b   : > { %p1658_p9 = pneg %p1657_p0 }
  0x3d   : > { %p1665_p4 = pnand %p1664_p1, %p1658_p9 }
  0x3f   : > { %1668 = shalt.err (!%p1665_p4)
}
  0x40   : > { %s1805_s6 = smov [#allocation7]   ;;  %s3463_s4 = sld [smem:[#allocation103_spill]] }
  0x41   : > { %1551 = dma.vmem_to_smem (!%p1907_p11), %s1903_s7, 16, %s1805_s6, [#allocation6]  }
  0x46   : > { %s1669_s29 = scalar_lea.hbm %s3463_s4, 256 }
  0x47   : > { %p1670_p6 = scmp.ne.s32.totalorder %s3463_s4, %s1669_s29  ;;  %p1676_p7 = scmp.lt.u32.totalorder %s1669_s29, %s3463_s4 }
  0x49   : > { %p1672_p8 = pnand %p1670_p6, %p1921_p13 }
  0x4b   : > { %p1673_p5 = pneg %p1672_p8 }
  0x4d   : > { %p1678_p10 = pnand %p1676_p7, %p1673_p5 }
  0x4f   : > { %1681 = shalt.err (!%p1678_p10)
}
  0x50   : > { %s1682_s7 = scalar_lea.vmem %s1911_s10, 256  ;;  %p1690_p3 = scmp.lt.s32.totalorder %s1911_s10, %s1911_s10 }
  0x51   : > { %p1683_p12 = scmp.ne.s32.totalorder %s1911_s10, %s1682_s7  ;;  %p1691_p2 = scmp.lt.s32.totalorder %s1682_s7, %s1682_s7 }
  0x53   : > { %p1685_p0 = pnand %p1683_p12, %p1921_p13  ;;  %p1692_p1 = por %p1691_p2, %p1690_p3 }
  0x55   : > { %p1686_p9 = pneg %p1685_p0 }
  0x57   : > { %p1693_p4 = pnand %p1692_p1, %p1686_p9 }
  0x59   : > { %1696 = shalt.err (!%p1693_p4)
}
  0x5a   : > { %1557 = dma.hbm_to_vmem [thread:$0]  (!%p1907_p11), %s3463_s4, 256, %s1911_s10, [#allocation9]  }
  0x5b   : > { %s1970_s16 = sadd.s32 1, %s1801_s23   ;;  %s31_s19 = sadd.s32 1, %s1797_s22 }
  0x5c   : > { %3464 = sst [smem:[#allocation22_spill]] %s1970_s16  ;;  %s28_s8 = ssub.s32 %s1801_s23, %s1970_s16 }
  0x5d   : > { %p29_p13 = scmp.eq.s32.totalorder %s28_s8, 0  ;;  %p38_p6 = scmp.ne.s32.totalorder %s1797_s22, %s1793_s21 }
  0x5e   : > { %p39_p8 = scmp.eq.s32.totalorder %s1801_s23, 0  ;;  %p1569_p5 = scmp.lt.s32.totalorder %s1801_s23, 2 }
  0x5f   : > { %s1980_s24 = scalar_select %p29_p13, %s1797_s22, %s31_s19  }
  0x60   : > { %p40_p7 = por %p39_p8, %p38_p6  ;;  %p3466_p10 = scmp.eq.s32.totalorder %s1874_s2, 1 }
  0x61   : > { %3465 = sst [smem:[#allocation23_spill]] %s1980_s24  ;;  %s214_s30 = sand.u32 1, %s1797_s22  }
  0x62   : > { %p1984_p12 = por %p3466_p10, %p38_p6  ;;  %s1530_s6 = sshll.u32 %s1801_s23, 7 }
  0x63   : > { %s1419_s10 = sshll.u32 %s214_s30, 3  ;;  %s3469_s0 = sld [smem:[#allocation100_spill]] }
  0x64   : > { %s3467_s28 = scalar_select %p1984_p12, 1, 0 }
  0x65   : > { %s218_s12 = scalar_lea.vmem [#allocation3], %s1419_s10  ;;  %p1995_p11 = pnand %p1569_p5, %p40_p7 }
  0x66   : > { %3468 = sst [smem:[#allocation24_spill]] %s3467_s28  ;;  %s226_s13 = sshll.u32 %s218_s12, 4  ;;  %s1999_s13 = int_to_ptr.vmem [resolvable:$true] %s226_s13 }
  0x67   : > { %s215_s15 = scalar_lea.sflag [#allocation4], %s214_s30  ;;  %p1699_p9 = pneg %p1995_p11 }
  0x69   : > { %s1993_s29 = scalar_lea.hbm %s3469_s0, %s1530_s6  ;;  %s1702_s8 = scalar_lea.hbm %s3469_s0, 256 }
  0x6a   : > { %s1697_s7 = scalar_lea.hbm %s1993_s29, 128  ;;  %p1703_p1 = scmp.lt.u32.totalorder %s1993_s29, %s3469_s0 }
  0x6b   : > { %p1698_p0 = scmp.ne.s32.totalorder %s1993_s29, %s1697_s7  ;;  %p1704_p4 = scmp.lt.u32.totalorder %s1702_s8, %s1697_s7 }
  0x6c   : > { %p1706_p6 = scmp.lt.u32.totalorder %s1697_s7, %s1993_s29 }
  0x6d   : > { %p1700_p3 = pnand %p1699_p9, %p1698_p0  ;;  %p1705_p13 = por %p1704_p4, %p1703_p1 }
  0x6f   : > { %p1701_p2 = pneg %p1700_p3  ;;  %p1707_p8 = por %p1706_p6, %p1705_p13 }
  0x71   : > { %p1708_p5 = pnand %p1707_p8, %p1701_p2 }
  0x73   : > { %1711 = shalt.err (!%p1708_p5)
}
  0x74   : > { %s1712_s30 = scalar_lea.vmem %s1999_s13, 128  ;;  %s1806_s10 = smov [#allocation3]  }
  0x75   : > { %p1713_p7 = scmp.ne.s32.totalorder %s1999_s13, %s1712_s30  ;;  %s1717_s9 = sshll.u32 %s1806_s10, 4  ;;  %s1718_s9 = int_to_ptr.vmem [resolvable:$false] %s1717_s9 }
  0x76   : > { %s1719_s11 = scalar_lea.vmem %s1718_s9, 256  ;;  %p1720_p3 = scmp.lt.s32.totalorder %s1999_s13, %s1718_s9 }
  0x77   : > { %p1715_p10 = pnand %p1713_p7, %p1699_p9  ;;  %p1721_p1 = scmp.lt.s32.totalorder %s1719_s11, %s1712_s30 }
  0x79   : > { %p1716_p0 = pneg %p1715_p10  ;;  %p1722_p4 = por %p1721_p1, %p1720_p3 }
  0x7b   : > { %p1723_p13 = pnand %p1722_p4, %p1716_p0 }
  0x7d   : > { %1726 = shalt.err (!%p1723_p13)
}
  0x7e   : > { %1561 = dma.hbm_to_vmem [thread:$0]  (!%p1995_p11), %s1993_s29, 128, %s1999_s13, %s215_s15  }
  0x7f   : > { %p3471_p2 = scmp.ne.s32.totalorder %s3458_s27, 0 }
  0x81   : > { %235 = sbr.rel (%p3471_p2) target bundleno = 589 (0x24d), region = 40 }
  0x88   : > { %s2029_s12 = sand.u32 1, %s1793_s21   ;;  %p3474_p9 = scmp.ne.s32.totalorder %s3455_s25, 0 }
  0x89   : > { %3472 = sst [smem:[#allocation25_spill]] %s2029_s12  ;;  %s3309_s7 = sshll.u32 %s2029_s12, 3 }
  0x8a   : > { %s238_s17 = scalar_lea.sflag [#allocation4], %s2029_s12  ;;  %s2035_s18 = scalar_lea.vmem [#allocation3], %s3309_s7 }
  0x8b   : > { %3473 = sst [smem:[#allocation26_spill]] %s2035_s18 }
  0x8c   : > { %1772 = dma.done.wait (%p3474_p9), %s238_s17, 128  }
  0x8d   : > { %1774 = vsyncadd (%p3474_p9), %s238_s17, 4294967168  ;;  %p3475_p11 = scmp.eq.s32.totalorder %s1874_s2, 0 }
  0x8f   : > { %1776 = dma.done.wait (%p3475_p11), [#allocation6], 16   ;;  %p3476_p6 = pmov %p3475_p11 }
  0x91   : > { %1778 = vsyncadd (%p3476_p6), [#allocation6], 4294967280  ;;  %p3477_p8 = pmov %p3476_p6 }
  0x92   : > { %p3478_p5 = pmov %p3476_p6 }
  0x93   : > { %1780 = dma.done.wait (%p3477_p8), [#allocation9], 512  }
  0x94   : > { %1782 = vsyncadd (%p3478_p5), [#allocation9], 4294966784 }
  0x95   : > { %258 = sfence }
  0x96   : > { %v281_v0 = vld [vmem:[%s2035_s18] sm:$0xff]  ;;  %v304_v1 = vlaneseq  ;;  %s1807_s25 = smov 2   ;;  %s1808_s27 = smov 3   ;;  %v2140_v23 = vld [vmem:[#allocation8] sm:$0x7f] }
  0x97   : > { %v283_v2 = vrot.slane %v281_v0, 5  ;;  %v288_v3 = vrot.slane %v281_v0, 6  ;;  %v293_v4 = vrot.slane %v281_v0, 7  ;;  %s1809_s29 = smov 1   ;;  %s1810_s13 = smov 127   ;;  %v353_v33 = vrot.slane %v2140_v23, 1 }
  0x98   : > { %v305_v7 = vshrl.u32 %v304_v1, 7  ;;  %s1811_s14 = smov 126   ;;  %s1812_s15 = smov 125   ;;  %v2134_v22 = vand.u32 127, %v304_v1  ;;  %v2148_v26 = vld [vmem:[#allocation8 + $0x8] sm:$0x7f] }
  0x99   : > { %v284_v5 = vrot.slane %v283_v2, 4  ;;  %v289_v6 = vrot.slane %v288_v3, 4  ;;  %v294_v9 = vrot.slane %v293_v4, 4  ;;  %s2067_s8 = sld [smem:[#allocation7]]  ;;  %s2069_s19 = sld [smem:[#allocation7 + $0x7]]  ;;  %v354_v34 = vrot.slane %v2148_v26, 1 }
  0x9a   : > { %v2051_v12 = vsub.s32 0, %v305_v7  ;;  %v2053_v13 = vsub.s32 4, %v305_v7  ;;  %s2071_s6 = sld [smem:[#allocation7 + $0xe]]  ;;  %s2073_s30 = sld [smem:[#allocation7 + $0x15]]  ;;  %3509 = vst [vmem:[#allocation57_spill] sm:$0xff] %v2134_v22  ;;  %vm320_vm0 = vcmp.lt.s32.totalorder %v2134_v22, 3 }
  0x9b   : > { %v286_v8 = vmax.f32 %v281_v0, %v284_v5  ;;  %v287_v10 = vadd.f32 %v284_v5, %v281_v0  ;;  %s2075_s10 = sld [smem:[#allocation7 + $0x1c]]  ;;  %s2077_s9 = sld [smem:[#allocation7 + $0x23]]  ;;  %vm348_vm1 = vcmp.lt.s32.totalorder %v2134_v22, 2  ;;  %vm371_vm2 = vcmp.lt.s32.totalorder %v2134_v22, 1 }
  0x9c   : > { %s2079_s11 = sld [smem:[#allocation7 + $0x2a]]  ;;  %s2081_s17 = sld [smem:[#allocation7 + $0x31]]  ;;  %vm392_vm3 = vcmp.lt.s32.totalorder %v2134_v22, 127  ;;  %vm413_vm4 = vcmp.lt.s32.totalorder %v2134_v22, 126  ;;  %vm434_vm5 = vcmp.lt.s32.totalorder %v2134_v22, 125 }
  0x9d   : > { %v291_v11 = vmax.f32 %v286_v8, %v289_v6  ;;  %v292_v14 = vadd.f32 %v289_v6, %v287_v10  ;;  %s2095_s7 = sld [smem:[#allocation7 + $0x1]]  ;;  %s2097_s0 = sld [smem:[#allocation7 + $0x8]] }
  0x9e   : > { %s2099_s1 = sld [smem:[#allocation7 + $0xf]]  ;;  %s2101_s3 = sld [smem:[#allocation7 + $0x16]] }
  0x9f   : > { %v2055_v15 = vmax.f32 %v291_v11, %v294_v9  ;;  %v297_v16 = vadd.f32 %v294_v9, %v292_v14  ;;  %3479 = sst [smem:[#allocation27_spill]] %s2067_s8  ;;  %s2103_s4 = sld [smem:[#allocation7 + $0x1d]]  ;;  %v453_v24 = vstv %s2067_s8  ;;  %v568_v25 = vstv %s2069_s19 }
  0xa0   : > { %3480 = sst [smem:[#allocation28_spill]] %s2069_s19  ;;  %s2107_s22 = sld [smem:[#allocation7 + $0x2b]]  ;;  %v689_v27 = vstv %s2071_s6  ;;  %v808_v28 = vstv %s2073_s30 }
  0xa1   : > { %v311_v17 = vrot.slane %v2055_v15, %v2053_v13  ;;  %v307_v18 = vrot.slane %v2055_v15, %v2051_v12  ;;  %v2061_v19 = vmul.f32 0.25, %v297_v16  ;;  %3481 = sst [smem:[#allocation29_spill]] %s2071_s6  ;;  %s2105_s24 = sld [smem:[#allocation7 + $0x24]]  ;;  %v914_v29 = vstv %s2075_s10 }
  0xa2   : > { %3482 = sst [smem:[#allocation30_spill]] %s2073_s30  ;;  %s2109_s21 = sld [smem:[#allocation7 + $0x47]]  ;;  %v1033_v30 = vstv %s2077_s9  ;;  %v1152_v31 = vstv %s2079_s11  ;;  %v458_v32 = vstv %s2081_s17 }
  0xa3   : > { %346 = vrot.lane.b32.xlu1 %v311_v17, %s1807_s25  ;;  %314 = vrot.lane.b32.xlu0 %v307_v18, %s1808_s27  ;;  %v329_v20 = vrot.slane %v2061_v19, %v2051_v12  ;;  %v333_v21 = vrot.slane %v2061_v19, %v2053_v13  ;;  %3483 = sst [smem:[#allocation31_spill]] %s2075_s10  ;;  %s2111_s16 = sld [smem:[#allocation7 + $0x32]] }
  0xa4   : > { %3484 = sst [smem:[#allocation32_spill]] %s2077_s9  ;;  %s2113_s23 = sld [smem:[#allocation7 + $0x17]]  ;;  %v820_v45 = vstv %s2101_s3 }
  0xa5   : > { %3485 = sst [smem:[#allocation33_spill]] %s2079_s11  ;;  %s2115_s26 = sld [smem:[#allocation7 + $0x2]] }
  0xa6   : > { %3486 = sst [smem:[#allocation34_spill]] %s2081_s17  ;;  %s2117_s20 = sld [smem:[#allocation7 + $0x33]] }
  0xa7   : > { %336 = vrot.lane.b32.xlu1 %v329_v20, %s1808_s27  ;;  %316 = vrot.lane.b32.xlu0 %v311_v17, %s1808_s27  ;;  %3493 = sst [smem:[#allocation41_spill]] %s2095_s7  ;;  %s2121_s28 = sld [smem:[#allocation7 + $0x3]] }
  0xa8   : > { %3494 = sst [smem:[#allocation42_spill]] %s2097_s0  ;;  %s2119_s5 = sld [smem:[#allocation7 + $0x39]] }
  0xa9   : > { %3495 = sst [smem:[#allocation43_spill]] %s2099_s1  ;;  %s2123_s18 = sld [smem:[#allocation7 + $0x9]] }
  0xaa   : > { %3496 = sst [smem:[#allocation44_spill]] %s2101_s3  ;;  %s2162_s6 = sld [smem:[#allocation7 + $0x6]] }
  0xab   : > { %338 = vrot.lane.b32.xlu1 %v333_v21, %s1808_s27  ;;  %344 = vrot.lane.b32.xlu0 %v307_v18, %s1807_s25  ;;  %s2085_s27 = sld [smem:[#allocation7 + $0x3f]]  ;;  %3497 = sst [smem:[#allocation45_spill]] %s2103_s4 }
  0xac   : > { %3498 = sst [smem:[#allocation46_spill]] %s2105_s24  ;;  %s2125_s12 = sld [smem:[#allocation7 + $0x34]] }
  0xad   : > { %3499 = sst [smem:[#allocation47_spill]] %s2107_s22  ;;  %s2127_s2 = sld [smem:[#allocation7 + $0x4]]  ;;  %v489_v42 = vstv %s2121_s28 }
  0xae   : > { %3500 = sst [smem:[#allocation48_spill]] %s2109_s21  ;;  %s2156_s19 = sld [smem:[#allocation7 + $0x3c]]  ;;  %v2200_v52 = vmul.f32 %v489_v42, %v2055_v15 }
  0xaf   : > { %361 = vrot.lane.b32.xlu1 %v333_v21, %s1807_s25  ;;  %359 = vrot.lane.b32.xlu0 %v329_v20, %s1807_s25  ;;  %s2083_s25 = sld [smem:[#allocation7 + $0x38]]  ;;  %3501 = sst [smem:[#allocation49_spill]] %s2111_s16 }
  0xb0   : > { %3502 = sst [smem:[#allocation50_spill]] %s2113_s23  ;;  %s2164_s10 = sld [smem:[#allocation7 + $0xc]] }
  0xb1   : > { %3488 = sst [smem:[#allocation36_spill]] %s2085_s27  ;;  %s2129_s16 = sld [smem:[#allocation7 + $0x3a]]  ;;  %v694_v36 = vstv %s2085_s27 }
  0xb2   : > { %3503 = sst [smem:[#allocation51_spill]] %s2115_s26  ;;  %s2131_s23 = sld [smem:[#allocation7 + $0xa]]  ;;  %v504_v50 = vstv %s2125_s12 }
  0xb3   : > { %369 = vrot.lane.b32.xlu1 %v311_v17, %s1809_s29  ;;  %367 = vrot.lane.b32.xlu0 %v307_v18, %s1809_s29  ;;  %3504 = sst [smem:[#allocation52_spill]] %s2117_s20  ;;  %s2136_s20 = sld [smem:[#allocation7 + $0x35]]  ;;  %v2220_v62 = vmul.f32 %v504_v50, %v2061_v19 }
  0xb4   : > { %3505 = sst [smem:[#allocation53_spill]] %s2119_s5  ;;  %s2138_s5 = sld [smem:[#allocation7 + $0x3b]] }
  0xb5   : > { %3487 = sst [smem:[#allocation35_spill]] %s2083_s25  ;;  %v573_v35 = vstv %s2083_s25  ;;  %s2170_s11 = sld [smem:[#allocation7 + $0x37]] }
  0xb6   : > { %3506 = sst [smem:[#allocation54_spill]] %s2123_s18  ;;  %s2144_s18 = sld [smem:[#allocation7 + $0x5]] }
  0xb7   : > { %382 = vrot.lane.b32.xlu1 %v333_v21, %s1809_s29  ;;  %380 = vrot.lane.b32.xlu0 %v329_v20, %s1809_s29  ;;  %s2087_s29 = sld [smem:[#allocation7 + $0x46]]  ;;  %3507 = sst [smem:[#allocation55_spill]] %s2127_s2 }
  0xb8   : > { %3508 = sst [smem:[#allocation56_spill]] %s2129_s16  ;;  %s2146_s16 = sld [smem:[#allocation7 + $0xb]]  ;;  %v604_v53 = vstv %s2131_s23 }
  0xb9   : > { %3510 = sst [smem:[#allocation58_spill]] %s2136_s20  ;;  %s2154_s20 = sld [smem:[#allocation7 + $0x36]]  ;;  %v2229_v1 = vmul.f32 %v604_v53, %v2055_v15 }
  0xba   : > { %3513 = sst [smem:[#allocation61_spill]] %s2162_s6  ;;  %s2172_s17 = sld [smem:[#allocation7 + $0x40]]  ;;  %v619_v54 = vstv %s2138_s5 }
  0xbb   : > { %390 = vrot.lane.b32.xlu1 %v311_v17, %s1810_s13  ;;  %388 = vrot.lane.b32.xlu0 %v307_v18, %s1810_s13  ;;  %3514 = sst [smem:[#allocation62_spill]] %s2164_s10  ;;  %s2180_s30 = sld [smem:[#allocation7 + $0x10]]  ;;  %v2232_v2 = vmul.f32 %v619_v54, %v2061_v19 }
  0xbc   : > { %3515 = sst [smem:[#allocation63_spill]] %s2170_s11  ;;  %s2178_s9 = sld [smem:[#allocation7 + $0x3d]] }
  0xbd   : > { %3489 = sst [smem:[#allocation37_spill]] %s2087_s29  ;;  %v813_v37 = vstv %s2087_s29  ;;  %s2188_s27 = sld [smem:[#allocation7 + $0x3e]] }
  0xbe   : > { %3511 = sst [smem:[#allocation59_spill]] %s2146_s16  ;;  %s2194_s7 = sld [smem:[#allocation7 + $0x11]] }
  0xbf   : > { %403 = vrot.lane.b32.xlu1 %v333_v21, %s1810_s13  ;;  %401 = vrot.lane.b32.xlu0 %v329_v20, %s1810_s13  ;;  %s2089_s13 = sld [smem:[#allocation7 + $0x4d]]  ;;  %3512 = sst [smem:[#allocation60_spill]] %s2154_s20 }
  0xc0   : > { %s2204_s1 = sld [smem:[#allocation7 + $0x41]]  ;;  %s2206_s22 = sld [smem:[#allocation7 + $0x4e]] }
  0xc1   : > { %3516 = sst [smem:[#allocation64_spill]] %s2180_s30  ;;  %s2212_s24 = sld [smem:[#allocation7 + $0x12]] }
  0xc2   : > { %s2214_s0 = sld [smem:[#allocation7 + $0x1f]]  ;;  %s2222_s5 = sld [smem:[#allocation7 + $0x1e]] }
  0xc3   : > { %411 = vrot.lane.b32.xlu1 %v311_v17, %s1811_s14  ;;  %409 = vrot.lane.b32.xlu0 %v307_v18, %s1811_s14  ;;  %s2224_s23 = sld [smem:[#allocation7 + $0x50]]  ;;  %s2234_s25 = sld [smem:[#allocation7 + $0x43]] }
  0xc4   : > { %s2236_s26 = sld [smem:[#allocation7 + $0x4f]]  ;;  %s2243_s3 = sld [smem:[#allocation7 + $0x13]] }
  0xc5   : > { %3490 = sst [smem:[#allocation38_spill]] %s2089_s13  ;;  %v919_v38 = vstv %s2089_s13  ;;  %s2186_s13 = sld [smem:[#allocation7 + $0xd]] }
  0xc6   : > { %3520 = sst [smem:[#allocation65_spill]] %s2204_s1  ;;  %s2245_s4 = sld [smem:[#allocation7 + $0x55]] }
  0xc7   : > { %424 = vrot.lane.b32.xlu1 %v333_v21, %s1811_s14  ;;  %422 = vrot.lane.b32.xlu0 %v329_v20, %s1811_s14  ;;  %s2091_s14 = sld [smem:[#allocation7 + $0x54]]  ;;  %3521 = sst [smem:[#allocation66_spill]] %s2206_s22 }
  0xc8   : > { %3523 = sst [smem:[#allocation67_spill]] %s2212_s24  ;;  %s2252_s12 = sld [smem:[#allocation7 + $0x20]]  ;;  %v950_v46 = vstv %s2214_s0 }
  0xc9   : > { %3525 = sst [smem:[#allocation68_spill]] %s2222_s5  ;;  %s2262_s2 = sld [smem:[#allocation7 + $0x44]]  ;;  %v965_v48 = vstv %s2224_s23 }
  0xca   : > { %3528 = sst [smem:[#allocation69_spill]] %s2234_s25  ;;  %s2264_s21 = sld [smem:[#allocation7 + $0x57]]  ;;  %v2327_v53 = vmul.f32 %v965_v48, %v2061_v19 }
  0xcb   : > { %432 = vrot.lane.b32.xlu1 %v311_v17, %s1812_s15  ;;  %430 = vrot.lane.b32.xlu0 %v307_v18, %s1812_s15  ;;  %3529 = sst [smem:[#allocation70_spill]] %s2236_s26  ;;  %s2272_s28 = sld [smem:[#allocation7 + $0x51]]  ;;  %v2318_v18 = vmul.f32 %v950_v46, %v2055_v15 }
  0xcc   : > { %3530 = sst [smem:[#allocation71_spill]] %s2245_s4  ;;  %s2274_s29 = sld [smem:[#allocation7 + $0x25]]  ;;  %3536 = vst [vmem:[#allocation77_spill] sm:$0xff] %v2327_v53 }
  0xcd   : > { %3491 = sst [smem:[#allocation39_spill]] %s2091_s14  ;;  %v1038_v39 = vstv %s2091_s14  ;;  %s2254_s14 = sld [smem:[#allocation7 + $0x26]] }
  0xce   : > { %3531 = sst [smem:[#allocation72_spill]] %s2252_s12  ;;  %s2280_s16 = sld [smem:[#allocation7 + $0x14]] }
  0xcf   : > { %445 = vrot.lane.b32.xlu1 %v333_v21, %s1812_s15  ;;  %443 = vrot.lane.b32.xlu0 %v329_v20, %s1812_s15  ;;  %s2093_s15 = sld [smem:[#allocation7 + $0x5b]]  ;;  %v725_v21 = vstv %s2194_s7  ;;  %s2282_s8 = sld [smem:[#allocation7 + $0x45]] }
  0xd0   : > { %s2289_s7 = sld [smem:[#allocation7 + $0x21]]  ;;  %v2296_v20 = vmul.f32 %v725_v21, %v2055_v15  ;;  %s2302_s11 = sld [smem:[#allocation7 + $0x27]]  ;;  %v1084_v48 = vstv %s2264_s21 }
  0xd1   : > { %3532 = sst [smem:[#allocation73_spill]] %s2272_s28  ;;  %s2304_s0 = sld [smem:[#allocation7 + $0x2d]]  ;;  %v2371_v21 = vmul.f32 %v1084_v48, %v2061_v19 }
  0xd2   : > { %3533 = sst [smem:[#allocation74_spill]] %s2274_s29  ;;  %s2310_s6 = sld [smem:[#allocation7 + $0x5c]] }
  0xd3   : > { %s2312_s20 = sld [smem:[#allocation7 + $0x5e]]  ;;  %s2320_s23 = sld [smem:[#allocation7 + $0x52]]  ;;  %v1069_v47 = vstv %s2254_s14  ;;  %3538 = vst [vmem:[#allocation79_spill] sm:$0xff] %v2371_v21 }
  0xd4   : > { %s2322_s10 = sld [smem:[#allocation7 + $0x58]]  ;;  %s2330_s30 = sld [smem:[#allocation7 + $0x2c]]  ;;  %v2360_v16 = vmul.f32 %v1069_v47, %v2055_v15 }
  0xd5   : > { %3492 = sst [smem:[#allocation40_spill]] %s2093_s15  ;;  %v1157_v40 = vstv %s2093_s15  ;;  %s2196_s15 = sld [smem:[#allocation7 + $0x42]] }
  0xd6   : > { %3534 = sst [smem:[#allocation75_spill]] %s2302_s11  ;;  %s2332_s1 = sld [smem:[#allocation7 + $0x18]]  ;;  %3537 = vst [vmem:[#allocation78_spill] sm:$0xff] %v2360_v16  ;;  %v3609_v16 = vrot.slane %v2140_v23, 5 }
  0xd7   : > { %s2340_s5 = sld [smem:[#allocation7 + $0x22]]  ;;  %s2343_s14 = sld [smem:[#allocation7 + $0x49]]  ;;  %v1188_v44 = vstv %s2304_s0 }
  0xd8   : > { %3535 = sst [smem:[#allocation76_spill]] %s2310_s6  ;;  %s2353_s25 = sld [smem:[#allocation7 + $0x28]]  ;;  %v2407_v9 = vmul.f32 %v1188_v44, %v2055_v15 }
  0xd9   : > { %s2350_s22 = sld [smem:[#allocation7 + $0x53]]  ;;  %s2362_s21 = sld [smem:[#allocation7 + $0x59]]  ;;  %v1203_v46 = vstv %s2312_s20 }
  0xda   : > { %s2364_s24 = sld [smem:[#allocation7 + $0x5d]]  ;;  %s2373_s4 = sld [smem:[#allocation7 + $0x2e]]  ;;  %3543 = vst [vmem:[#allocation84_spill] sm:$0xff] %v2407_v9 }
  0xdb   : > { %v740_v42 = vstv %s2196_s15  ;;  %s2291_s15 = sld [smem:[#allocation7 + $0x56]]  ;;  %s2379_s12 = sld [smem:[#allocation7 + $0x29]] }
  0xdc   : > { %v2299_v55 = vmul.f32 %v740_v42, %v2061_v19  ;;  %s2381_s26 = sld [smem:[#allocation7 + $0x5a]]  ;;  %s2391_s29 = sld [smem:[#allocation7 + $0x5f]]  ;;  %v844_v54 = vstv %s2332_s1  ;;  %v2415_v42 = vmul.f32 %v1203_v46, %v2061_v19 }
  0xdd   : > { %s2393_s28 = sld [smem:[#allocation7 + $0x48]]  ;;  %s2401_s0 = sld [smem:[#allocation7 + $0x2f]]  ;;  %v859_v47 = vstv %s2343_s14  ;;  %v2434_v14 = vmul.f32 %v844_v54, %v2055_v15 }
  0xde   : > { %s2410_s20 = sld [smem:[#allocation7 + $0x19]]  ;;  %3545 = vst [vmem:[#allocation86_spill] sm:$0xff] %v2415_v42  ;;  %s2417_s6 = sld [smem:[#allocation7 + $0x60]]  ;;  %v2443_v46 = vmul.f32 %v859_v47, %v2061_v19  ;;  %v3588_v42 = vrot.slane %v2140_v23, 2 }
  0xdf   : > { %s2419_s11 = sld [smem:[#allocation7 + $0x30]]  ;;  %s2431_s1 = sld [smem:[#allocation7 + $0x61]]  ;;  %3548 = vst [vmem:[#allocation89_spill] sm:$0xff] %v2434_v14  ;;  %v3581_v14 = vrot.slane %v2140_v23, 2 }
  0xe0   : > { %3539 = sst [smem:[#allocation80_spill]] %s2373_s4  ;;  %3549 = vst [vmem:[#allocation90_spill] sm:$0xff] %v2443_v46  ;;  %s3573_s14 = sld [smem:[#allocation42_spill]] }
  0xe1   : > { %s3583_s4 = sld [smem:[#allocation52_spill]] }
  0xe2   : > { %3540 = sst [smem:[#allocation81_spill]] %s2391_s29  ;;  %s3576_s29 = sld [smem:[#allocation49_spill]] }
  0xe3   : > { %3541 = sst [smem:[#allocation82_spill]] %s2393_s28  ;;  %s3589_s28 = sld [smem:[#allocation55_spill]] }
  0xe4   : > { %3542 = sst [smem:[#allocation83_spill]] %s2401_s0  ;;  %s3582_s0 = sld [smem:[#allocation51_spill]] }
  0xe5   : > { %3544 = sst [smem:[#allocation85_spill]] %s2410_s20  ;;  %s3592_s20 = sld [smem:[#allocation53_spill]] }
  0xe6   : > { %3546 = sst [smem:[#allocation87_spill]] %s2417_s6  ;;  %s3596_s6 = sld [smem:[#allocation54_spill]] }
  0xe7   : > { %3547 = sst [smem:[#allocation88_spill]] %s2419_s11  ;;  %s3568_s11 = sld [smem:[#allocation41_spill]] }
 0x115   : > { %v2384_v8 = vpop.permute.xlu1 %346  ;;  %v315_v48 = vpop.permute.xlu0 %314 }
 0x119   : > { %v337_v59 = vpop.permute.xlu1 %336  ;;  %v317_v44 = vpop.permute.xlu0 %316 }
 0x11a   : > { %v321_v7 = vsel %vm320_vm0, %v315_v48, %v317_v44  ;;  %v322_v17 = vsel %vm320_vm0, %v317_v44, %v315_v48 }
 0x11b   : > { %v323_v47 = vmul.f32 %v322_v17, %v2140_v23  ;;  %v324_v11 = vmul.f32 %v321_v7, %v2148_v26 }
 0x11d   : > { %v339_v4 = vpop.permute.xlu1 %338  ;;  %v345_v63 = vpop.permute.xlu0 %344  ;;  %v2485_v48 = vmul.f32 %v453_v24, %v323_v47  ;;  %v2496_v54 = vmul.f32 %v568_v25, %v324_v11  ;;  %v810_v60 = vmul.f32 %v808_v28, %v324_v11  ;;  %v2525_v0 = vmul.f32 %v914_v29, %v323_v47 }
 0x11e   : > { %v340_v7 = vsel %vm320_vm0, %v337_v59, %v339_v4  ;;  %v341_v15 = vsel %vm320_vm0, %v339_v4, %v337_v59  ;;  %v349_v17 = vsel %vm348_vm1, %v345_v63, %v2384_v8  ;;  %v350_v59 = vsel %vm348_vm1, %v2384_v8, %v345_v63 }
 0x11f   : > { %v342_v19 = vmul.f32 %v341_v15, %v2140_v23  ;;  %v343_v44 = vmul.f32 %v340_v7, %v2148_v26  ;;  %v455_v15 = vmul.f32 %v453_v24, %v324_v11  ;;  %v2491_v7 = vmul.f32 %v568_v25, %v323_v47 }
 0x120   : > { %v2500_v63 = vmul.f32 %v689_v27, %v323_v47  ;;  %v809_v8 = vmul.f32 %v808_v28, %v323_v47  ;;  %v2513_v25 = vmul.f32 %v353_v33, %v350_v59  ;;  %v2517_v6 = vmul.f32 %v354_v34, %v349_v17 }
 0x121   : > { %v362_v4 = vpop.permute.xlu1 %361  ;;  %v360_v50 = vpop.permute.xlu0 %359  ;;  %v814_v24 = vmul.f32 %v813_v37, %v342_v19  ;;  %v815_v10 = vmul.f32 %v813_v37, %v343_v44  ;;  %v2521_v28 = vmul.f32 %v689_v27, %v324_v11  ;;  %v2529_v37 = vmul.f32 %v914_v29, %v324_v11 }
 0x122   : > { %v2533_v59 = vmul.f32 %v1033_v30, %v323_v47  ;;  %v2537_v27 = vmul.f32 %v1033_v30, %v324_v11  ;;  %v2541_v3 = vmul.f32 %v1152_v31, %v323_v47  ;;  %v2545_v29 = vmul.f32 %v1152_v31, %v324_v11 }
 0x123   : > { %v816_v61 = vadd.f32 %v814_v24, %v809_v8  ;;  %v817_v56 = vadd.f32 %v815_v10, %v810_v60  ;;  %v459_v58 = vmul.f32 %v458_v32, %v342_v19  ;;  %v363_v57 = vsel %vm348_vm1, %v360_v50, %v362_v4 }
 0x124   : > { %3561 = vst [vmem:[#allocation91_spill] sm:$0xff] %v2533_v59  ;;  %3564 = vst [vmem:[#allocation92_spill] sm:$0xff] %v2541_v3  ;;  %v364_v30 = vsel %vm348_vm1, %v362_v4, %v360_v50  ;;  %v460_v43 = vmul.f32 %v458_v32, %v343_v44  ;;  %v2557_v47 = vmul.f32 %v573_v35, %v342_v19 }
 0x125   : > { %v370_v5 = vpop.permute.xlu1 %369  ;;  %v368_v17 = vpop.permute.xlu0 %367  ;;  %3566 = vst [vmem:[#allocation93_spill] sm:$0xff] %v2545_v29  ;;  %v821_v60 = vmul.f32 %v820_v45, %v2513_v25  ;;  %v822_v31 = vmul.f32 %v820_v45, %v2517_v6  ;;  %v575_v10 = vmul.f32 %v573_v35, %v343_v44  ;;  %v2569_v11 = vmul.f32 %v694_v36, %v342_v19 }
 0x126   : > { %v2573_v50 = vmul.f32 %v694_v36, %v343_v44  ;;  %v2577_v32 = vmul.f32 %v919_v38, %v342_v19  ;;  %v2581_v24 = vmul.f32 %v919_v38, %v343_v44  ;;  %v2585_v45 = vmul.f32 %v1038_v39, %v342_v19 }
 0x127   : > { %v2587_v35 = vadd.f32 %v821_v60, %v816_v61  ;;  %v2589_v49 = vadd.f32 %v822_v31, %v817_v56  ;;  %v2593_v36 = vmul.f32 %v1038_v39, %v343_v44  ;;  %v2597_v51 = vmul.f32 %v363_v57, %v354_v34 }
 0x128   : > { %3569 = vst [vmem:[#allocation94_spill] sm:$0xff] %v2585_v45  ;;  %v372_v41 = vsel %vm371_vm2, %v368_v17, %v370_v5  ;;  %v373_v38 = vsel %vm371_vm2, %v370_v5, %v368_v17  ;;  %v2606_v56 = vmul.f32 %v1157_v40, %v342_v19  ;;  %v2610_v61 = vmul.f32 %v1157_v40, %v343_v44 }
 0x129   : > { %v383_v4 = vpop.permute.xlu1 %382  ;;  %v381_v8 = vpop.permute.xlu0 %380  ;;  %3570 = vst [vmem:[#allocation95_spill] sm:$0xff] %v2587_v35  ;;  %3571 = vst [vmem:[#allocation96_spill] sm:$0xff] %v2589_v49  ;;  %v2614_v34 = vmul.f32 %v364_v30, %v353_v33  ;;  %v3577_v57 = vstv %s3568_s11  ;;  %v3578_v17 = vrot.slane %v2148_v26, 2  ;;  %s3599_s11 = sld [smem:[#allocation56_spill]] }
 0x12a   : > { %3572 = vst [vmem:[#allocation97_spill] sm:$0xff] %v2593_v36  ;;  %3574 = vst [vmem:[#allocation98_spill] sm:$0xff] %v2606_v56  ;;  %v384_v39 = vsel %vm371_vm2, %v381_v8, %v383_v4  ;;  %v466_v5 = vmul.f32 %v3577_v57, %v2513_v25  ;;  %v385_v40 = vsel %vm371_vm2, %v383_v4, %v381_v8  ;;  %v3580_v31 = vmov %v3577_v57 }
 0x12b   : > { %3575 = vst [vmem:[#allocation99_spill] sm:$0xff] %v2610_v61  ;;  %v2623_v60 = vmul.f32 %v3578_v17, %v372_v41  ;;  %v3579_v44 = vmov %v3578_v17  ;;  %v467_v46 = vmul.f32 %v3580_v31, %v2517_v6  ;;  %v2636_v57 = vmul.f32 %v3581_v14, %v373_v38 }
 0x12c   : > { %v2629_v19 = vmul.f32 %v384_v39, %v3579_v44  ;;  %v3584_v8 = vstv %s3573_s14  ;;  %v3585_v17 = vrot.slane %v2148_v26, 4  ;;  %v462_v31 = vadd.f32 %v460_v43, %v455_v15  ;;  %s3601_s14 = sld [smem:[#allocation58_spill]] }
 0x12d   : > { %v391_v33 = vpop.permute.xlu1 %390  ;;  %v389_v30 = vpop.permute.xlu0 %388  ;;  %v2645_v39 = vmul.f32 %v3584_v8, %v2513_v25  ;;  %v3586_v14 = vstv %s3576_s29  ;;  %v3587_v49 = vmov %v3584_v8  ;;  %v2659_v9 = vmul.f32 %v385_v40, %v3588_v42  ;;  %s3604_s29 = sld [smem:[#allocation59_spill]] }
 0x12e   : > { %v393_v41 = vsel %vm392_vm3, %v389_v30, %v391_v33  ;;  %v394_v4 = vsel %vm392_vm3, %v391_v33, %v389_v30  ;;  %v472_v38 = vmul.f32 %v3586_v14, %v2597_v51  ;;  %v582_v35 = vmul.f32 %v3587_v49, %v2517_v6 }
 0x12f   : > { %v2649_v44 = vmul.f32 %v3585_v17, %v394_v4  ;;  %v461_v33 = vadd.f32 %v459_v58, %v2485_v48  ;;  %v3590_v30 = vmov %v3586_v14  ;;  %v3591_v4 = vrot.slane %v2140_v23, 4 }
 0x130   : > { %v471_v8 = vmul.f32 %v3590_v30, %v2614_v34  ;;  %v469_v14 = vadd.f32 %v467_v46, %v462_v31  ;;  %v3593_v49 = vstv %s3582_s0  ;;  %v3594_v42 = vstv %s3583_s4  ;;  %s3613_s0 = sld [smem:[#allocation62_spill]] }
 0x131   : > { %v2667_v17 = vmul.f32 %v3591_v4, %v393_v41  ;;  %v404_v43 = vpop.permute.xlu1 %403  ;;  %v402_v15 = vpop.permute.xlu0 %401  ;;  %v479_v56 = vmul.f32 %v3593_v49, %v2623_v60  ;;  %v484_v40 = vmul.f32 %v3594_v42, %v2629_v19  ;;  %v468_v41 = vadd.f32 %v466_v5, %v461_v33 }
 0x132   : > { %v405_v58 = vsel %vm392_vm3, %v402_v15, %v404_v43  ;;  %v406_v48 = vsel %vm392_vm3, %v404_v43, %v402_v15  ;;  %v3595_v30 = vmov %v3593_v49  ;;  %v3597_v46 = vrot.slane %v2148_v26, 4 }
 0x133   : > { %v478_v4 = vmul.f32 %v3595_v30, %v2636_v57  ;;  %v474_v49 = vadd.f32 %v472_v38, %v469_v14  ;;  %v3598_v42 = vstv %s3589_s28  ;;  %v577_v61 = vadd.f32 %v575_v10, %v2496_v54  ;;  %s3635_s28 = sld [smem:[#allocation43_spill]] }
 0x134   : > { %v2684_v31 = vmul.f32 %v406_v48, %v3597_v46  ;;  %v523_v3 = vmul.f32 %v3598_v42, %v2649_v44  ;;  %v3600_v43 = vrot.slane %v2140_v23, 4  ;;  %v473_v33 = vadd.f32 %v471_v8, %v468_v41 }
 0x135   : > { %v3602_v15 = vstv %s3583_s4  ;;  %v3603_v48 = vstv %s3592_s20  ;;  %v412_v29 = vpop.permute.xlu1 %411  ;;  %v410_v38 = vpop.permute.xlu0 %409  ;;  %v481_v14 = vadd.f32 %v479_v56, %v474_v49  ;;  %v522_v54 = vmul.f32 %v3598_v42, %v2667_v17  ;;  %s3619_s4 = sld [smem:[#allocation60_spill]] }
 0x136   : > { %v2693_v5 = vmul.f32 %v405_v58, %v3600_v43  ;;  %v483_v30 = vmul.f32 %v3602_v15, %v2659_v9  ;;  %v587_v46 = vmul.f32 %v3603_v48, %v2597_v51  ;;  %v584_v10 = vadd.f32 %v582_v35, %v577_v61 }
 0x137   : > { %v3605_v58 = vstv %s3596_s6  ;;  %v414_v8 = vsel %vm413_vm4, %v410_v38, %v412_v29  ;;  %v415_v41 = vsel %vm413_vm4, %v412_v29, %v410_v38  ;;  %v480_v15 = vadd.f32 %v478_v4, %v473_v33 }
 0x138   : > { %v594_v43 = vmul.f32 %v3605_v58, %v2623_v60  ;;  %v3606_v48 = vstv %s3599_s11  ;;  %v3607_v56 = vrot.slane %v2148_v26, 5  ;;  %v486_v42 = vadd.f32 %v484_v40, %v481_v14 }
 0x139   : > { %v599_v21 = vmul.f32 %v3606_v48, %v2629_v19  ;;  %v3608_v35 = vstv %s3601_s14  ;;  %v589_v58 = vadd.f32 %v587_v46, %v584_v10  ;;  %v2723_v45 = vmul.f32 %v3609_v16, %v414_v8  ;;  %v423_v40 = vpop.permute.xlu0 %422  ;;  %s3649_s14 = sld [smem:[#allocation64_spill]] }
 0x13a   : > { %v2716_v49 = vmul.f32 %v3607_v56, %v415_v41  ;;  %v528_v61 = vmul.f32 %v3608_v35, %v2684_v31  ;;  %v485_v29 = vadd.f32 %v483_v30, %v480_v15  ;;  %v3610_v4 = vmov %v3608_v35  ;;  %v425_v41 = vpop.permute.xlu1 %424 }
 0x13b   : > { %v527_v33 = vmul.f32 %v3610_v4, %v2693_v5  ;;  %v3611_v38 = vstv %s3604_s29  ;;  %v3612_v14 = vrot.slane %v2200_v52, %v2053_v13  ;;  %v596_v10 = vadd.f32 %v594_v43, %v589_v58 }
 0x13c   : > { %v638_v48 = vmul.f32 %v3611_v38, %v2649_v44  ;;  %v3614_v16 = vstv %s2156_s19  ;;  %v576_v30 = vadd.f32 %v2557_v47, %v2491_v7  ;;  %v426_v15 = vsel %vm413_vm4, %v423_v40, %v425_v41 }
 0x13d   : > { %v503_v46 = vadd.f32 %v3612_v14, %v486_v42  ;;  %v643_v8 = vmul.f32 %v3614_v16, %v2684_v31  ;;  %v427_v56 = vsel %vm413_vm4, %v425_v41, %v423_v40  ;;  %v3615_v35 = vrot.slane %v2200_v52, %v2051_v12 }
 0x13e   : > { %v3616_v42 = vstv %s3592_s20  ;;  %v3617_v58 = vrot.slane %v2148_v26, 5  ;;  %v3618_v7 = vrot.slane %v2220_v62, %v2053_v13  ;;  %v3620_v14 = vstv %s2144_s18  ;;  %s3627_s18 = sld [smem:[#allocation61_spill]]  ;;  %s3637_s20 = sld [smem:[#allocation63_spill]] }
 0x13f   : > { %v502_v4 = vadd.f32 %v3615_v35, %v485_v29  ;;  %v586_v43 = vmul.f32 %v3616_v42, %v2614_v34  ;;  %v535_v41 = vmul.f32 %v3620_v14, %v2716_v49  ;;  %v601_v40 = vadd.f32 %v599_v21, %v596_v10 }
 0x140   : > { %v2751_v38 = vmul.f32 %v427_v56, %v3617_v58  ;;  %v518_v47 = vadd.f32 %v3618_v7, %v503_v46  ;;  %v3621_v52 = vrot.slane %v2140_v23, 5  ;;  %v3622_v29 = vrot.slane %v2220_v62, %v2051_v12  ;;  %v433_v46 = vpop.permute.xlu1 %432  ;;  %v431_v7 = vpop.permute.xlu0 %430 }
 0x141   : > { %v3623_v56 = vmov %v3620_v14  ;;  %v3624_v58 = vstv %s3613_s0  ;;  %v3625_v10 = vrot.slane %v2229_v1, %v2053_v13  ;;  %v583_v14 = vadd.f32 %v2645_v39, %v576_v30 }
 0x142   : > { %v2761_v16 = vmul.f32 %v426_v15, %v3621_v52  ;;  %v517_v35 = vadd.f32 %v3622_v29, %v502_v4  ;;  %v534_v42 = vmul.f32 %v3623_v56, %v2723_v45  ;;  %v650_v59 = vmul.f32 %v3624_v58, %v2716_v49 }
 0x143   : > { %v525_v21 = vadd.f32 %v523_v3, %v518_v47  ;;  %v618_v15 = vadd.f32 %v3625_v10, %v601_v40  ;;  %v3626_v62 = vstv %s3596_s6  ;;  %v435_v52 = vsel %vm434_vm5, %v431_v7, %v433_v46  ;;  %s3638_s6 = sld [smem:[#allocation45_spill]] }
 0x144   : > { %v593_v4 = vmul.f32 %v3626_v62, %v2636_v57  ;;  %v436_v29 = vsel %vm434_vm5, %v433_v46, %v431_v7  ;;  %v3628_v56 = vstv %s3619_s4  ;;  %v524_v3 = vadd.f32 %v522_v54, %v517_v35  ;;  %s3652_s4 = sld [smem:[#allocation47_spill]] }
 0x145   : > { %v540_v58 = vmul.f32 %v3628_v56, %v2751_v38  ;;  %v3629_v47 = vrot.slane %v2140_v23, 6  ;;  %v3630_v39 = vrot.slane %v2148_v26, 6  ;;  %v530_v40 = vadd.f32 %v528_v61, %v525_v21 }
 0x146   : > { %v3631_v10 = vrot.slane %v2232_v2, %v2053_v13  ;;  %v529_v36 = vadd.f32 %v527_v33, %v524_v3  ;;  %v3632_v46 = vmov %v3628_v56  ;;  %v3633_v54 = vstv %s2178_s9 }
 0x147   : > { %v2788_v53 = vmul.f32 %v3629_v47, %v435_v52  ;;  %v2792_v30 = vmul.f32 %v3630_v39, %v436_v29  ;;  %v539_v7 = vmul.f32 %v3632_v46, %v2761_v16  ;;  %v655_v35 = vmul.f32 %v3633_v54, %v2751_v38  ;;  %v446_v47 = vpop.permute.xlu1 %445  ;;  %v444_v29 = vpop.permute.xlu0 %443 }
 0x148   : > { %v633_v62 = vadd.f32 %v3631_v10, %v618_v15  ;;  %v3634_v52 = vstv %s3599_s11  ;;  %v537_v39 = vadd.f32 %v535_v41, %v530_v40  ;;  %v3636_v61 = vstv %s3627_s18  ;;  %s3645_s11 = sld [smem:[#allocation46_spill]]  ;;  %s3655_s18 = sld [smem:[#allocation65_spill]] }
 0x149   : > { %v598_v56 = vmul.f32 %v3634_v52, %v2659_v9  ;;  %v547_v21 = vmul.f32 %v3636_v61, %v2792_v30  ;;  %v588_v33 = vadd.f32 %v586_v43, %v583_v14  ;;  %v447_v3 = vsel %vm434_vm5, %v444_v29, %v446_v47 }
 0x14a   : > { %v640_v15 = vadd.f32 %v638_v48, %v633_v62  ;;  %v448_v10 = vsel %vm434_vm5, %v446_v47, %v444_v29  ;;  %v536_v46 = vadd.f32 %v534_v42, %v529_v36  ;;  %v3639_v54 = vmov %v3636_v61 }
 0x14b   : > { %v546_v52 = vmul.f32 %v3639_v54, %v2788_v53  ;;  %v3640_v41 = vrot.slane %v2140_v23, 6  ;;  %v3641_v48 = vrot.slane %v2148_v26, 6  ;;  %v542_v43 = vadd.f32 %v540_v58, %v537_v39 }
 0x14c   : > { %v645_v14 = vadd.f32 %v643_v8, %v640_v15  ;;  %v3642_v61 = vstv %s3635_s28  ;;  %v541_v47 = vadd.f32 %v539_v7, %v536_v46  ;;  %v3643_v36 = vstv %s2186_s13  ;;  %s1813_s28 = smov 48  }
 0x14d   : > { %v2818_v40 = vmul.f32 %v447_v3, %v3640_v41  ;;  %v2822_v62 = vmul.f32 %v448_v10, %v3641_v48  ;;  %v702_v22 = vmul.f32 %v3642_v61, %v2513_v25  ;;  %v662_v42 = vmul.f32 %v3643_v36, %v2792_v30 }
 0x14e   : > { %v595_v29 = vadd.f32 %v593_v4, %v588_v33  ;;  %v549_v23 = vadd.f32 %v547_v21, %v542_v43  ;;  %v3644_v3 = vstv %s3637_s20  ;;  %v652_v39 = vadd.f32 %v650_v59, %v645_v14  ;;  %s3663_s20 = sld [smem:[#allocation67_spill]] }
 0x14f   : > { %v552_v26 = vmul.f32 %v3644_v3, %v2822_v62  ;;  %v3646_v10 = vmov %v3644_v3  ;;  %v3647_v8 = vmov %v3642_v61  ;;  %v3648_v54 = vstv %s3638_s6  ;;  %s3665_s6 = sld [smem:[#allocation69_spill]] }
 0x150   : > { %v551_v58 = vmul.f32 %v3646_v10, %v2818_v40  ;;  %v703_v15 = vmul.f32 %v3647_v8, %v2517_v6  ;;  %v2842_v7 = vmul.f32 %v3648_v54, %v2513_v25  ;;  %v548_v46 = vadd.f32 %v546_v52, %v541_v47 }
 0x151   : > { %v600_v4 = vadd.f32 %v598_v56, %v595_v29  ;;  %v554_v21 = vadd.f32 %v552_v26, %v549_v23  ;;  %v657_v33 = vadd.f32 %v655_v35, %v652_v39  ;;  %v3650_v41 = vstv %s2188_s27 }
 0x152   : > { %v667_v48 = vmul.f32 %v3650_v41, %v2822_v62  ;;  %v698_v59 = vadd.f32 %v2573_v50, %v2521_v28  ;;  %v3651_v43 = vmov %v3648_v54  ;;  %v553_v61 = vadd.f32 %v551_v58, %v548_v46 }
 0x153   : > { %v928_v14 = vmul.f32 %v3651_v43, %v2517_v6  ;;  %v3653_v52 = vrot.slane %v2229_v1, %v2051_v12  ;;  %v3654_v56 = vstv %s2172_s17  ;;  %v3656_v36 = vstv %s3645_s11  ;;  %557 = vrot.lane.b32.xlu1 %v554_v21, %s1813_s28  ;;  %s3691_s17 = sld [smem:[#allocation72_spill]]  ;;  %s1817_s11 = smov 96  }
 0x154   : > { %v708_v35 = vmul.f32 %v3654_v56, %v2597_v51  ;;  %v2861_v29 = vmul.f32 %v3656_v36, %v2513_v25  ;;  %v664_v28 = vadd.f32 %v662_v42, %v657_v33  ;;  %v705_v50 = vadd.f32 %v703_v15, %v698_v59  ;;  %555 = vrot.lane.b32.xlu0 %v553_v61, %s1813_s28  ;;  %s1818_s28 = smov 80  }
 0x155   : > { %v617_v47 = vadd.f32 %v3653_v52, %v600_v4  ;;  %v3657_v23 = vstv %s3649_s14  ;;  %v3658_v1 = vmov %v3656_v36  ;;  %v3659_v10 = vrot.slane %v2232_v2, %v2051_v12 }
 0x156   : > { %v715_v3 = vmul.f32 %v3657_v23, %v2623_v60  ;;  %v2869_v26 = vmul.f32 %v3658_v1, %v2517_v6  ;;  %v3660_v39 = vstv %s3604_s29  ;;  %v3661_v42 = vstv %s2156_s19  ;;  %s1814_s19 = smov 32   ;;  %s3669_s29 = sld [smem:[#allocation66_spill]] }
 0x157   : > { %v632_v58 = vadd.f32 %v3659_v10, %v617_v47  ;;  %v637_v8 = vmul.f32 %v3660_v39, %v2667_v17  ;;  %v642_v15 = vmul.f32 %v3661_v42, %v2693_v5  ;;  %v3662_v54 = vstv %s3652_s4 }
 0x158   : > { %v2883_v46 = vmul.f32 %v3662_v54, %v2517_v6  ;;  %v669_v4 = vadd.f32 %v667_v48, %v664_v28  ;;  %v710_v21 = vadd.f32 %v708_v35, %v705_v50  ;;  %v3664_v33 = vstv %s3655_s18  ;;  %s3199_s18 = sld [smem:[#allocation7 + $0x4c]] }
 0x159   : > { %v720_v41 = vmul.f32 %v3664_v33, %v2629_v19  ;;  %v639_v2 = vadd.f32 %v637_v8, %v632_v58  ;;  %v3666_v59 = vstv %s3613_s0  ;;  %v697_v61 = vadd.f32 %v2569_v11, %v2500_v63  ;;  %s3672_s0 = sld [smem:[#allocation68_spill]] }
 0x15a   : > { %v649_v43 = vmul.f32 %v3666_v59, %v2723_v45  ;;  %v3667_v52 = vmov %v3654_v56  ;;  %672 = vrot.lane.b32.xlu1 %v669_v4, %s1814_s19  ;;  %v3668_v6 = vstv %s2178_s9  ;;  %v3670_v56 = vstv %s2186_s13  ;;  %s3677_s9 = sld [smem:[#allocation70_spill]]  ;;  %s3728_s13 = sld [smem:[#allocation76_spill]] }
 0x15b   : > { %v707_v47 = vmul.f32 %v3667_v52, %v2614_v34  ;;  %v654_v48 = vmul.f32 %v3668_v6, %v2761_v16  ;;  %v661_v35 = vmul.f32 %v3670_v56, %v2788_v53  ;;  %v3671_v36 = vstv %s2188_s27  ;;  %s3693_s27 = sld [smem:[#allocation73_spill]] }
 0x15c   : > { %v666_v28 = vmul.f32 %v3671_v36, %v2818_v40  ;;  %v717_v50 = vadd.f32 %v715_v3, %v710_v21  ;;  %v644_v63 = vadd.f32 %v642_v15, %v639_v2  ;;  %v3673_v11 = vstv %s3663_s20 }
 0x15d   : > { %v759_v23 = vmul.f32 %v3673_v11, %v2649_v44  ;;  %v704_v1 = vadd.f32 %v702_v22, %v697_v61  ;;  %v3674_v10 = vstv %s3649_s14  ;;  %v3675_v8 = vstv %s3665_s6  ;;  %s3190_s14 = sld [smem:[#allocation7 + $0x1b]] }
 0x15e   : > { %v714_v58 = vmul.f32 %v3674_v10, %v2636_v57  ;;  %v722_v39 = vadd.f32 %v720_v41, %v717_v50  ;;  %v764_v42 = vmul.f32 %v3675_v8, %v2684_v31  ;;  %v3676_v54 = vstv %s2243_s3 }
 0x15f   : > { %v771_v4 = vmul.f32 %v3676_v54, %v2716_v49  ;;  %v923_v3 = vadd.f32 %v2581_v24, %v2529_v37  ;;  %v651_v15 = vadd.f32 %v649_v43, %v644_v63  ;;  %v709_v21 = vadd.f32 %v707_v47, %v704_v1 }
 0x160   : > { %v3678_v22 = vmov %v3664_v33  ;;  %v3679_v2 = vstv %s3669_s29  ;;  %v3680_v59 = vrot.slane %v2296_v20, %v2053_v13  ;;  %v3681_v52 = vstv %s2262_s2 }
 0x161   : > { %v719_v33 = vmul.f32 %v3678_v22, %v2659_v9  ;;  %v933_v41 = vmul.f32 %v3679_v2, %v2597_v51  ;;  %v776_v6 = vmul.f32 %v3681_v52, %v2751_v38  ;;  %v930_v56 = vadd.f32 %v928_v14, %v923_v3 }
 0x162   : > { %v739_v61 = vadd.f32 %v3680_v59, %v722_v39  ;;  %v3682_v37 = vstv %s3672_s0  ;;  %v656_v43 = vadd.f32 %v654_v48, %v651_v15  ;;  %v3683_v47 = vstv %s2280_s16 }
 0x163   : > { %v940_v24 = vmul.f32 %v3682_v37, %v2623_v60  ;;  %v783_v36 = vmul.f32 %v3683_v47, %v2792_v30  ;;  %v3684_v50 = vstv %s2282_s8  ;;  %v716_v11 = vadd.f32 %v714_v58, %v709_v21 }
 0x164   : > { %v788_v63 = vmul.f32 %v3684_v50, %v2822_v62  ;;  %v3685_v1 = vrot.slane %v2299_v55, %v2053_v13  ;;  %v3686_v39 = vstv %s3663_s20  ;;  %v935_v8 = vadd.f32 %v933_v41, %v930_v56  ;;  %s3803_s20 = sld [smem:[#allocation20_spill]] }
 0x165   : > { %v758_v14 = vmul.f32 %v3686_v39, %v2667_v17  ;;  %v3687_v54 = vstv %s3677_s9  ;;  %v663_v3 = vadd.f32 %v661_v35, %v656_v43  ;;  %v721_v15 = vadd.f32 %v719_v33, %v716_v11 }
 0x166   : > { %v754_v10 = vadd.f32 %v3685_v1, %v739_v61  ;;  %v945_v48 = vmul.f32 %v3687_v54, %v2629_v19  ;;  %v3688_v22 = vstv %s3665_s6  ;;  %v922_v58 = vadd.f32 %v2577_v32, %v2525_v0  ;;  %s3804_s6 = sld [smem:[#allocation25_spill]] }
 0x167   : > { %v763_v2 = vmul.f32 %v3688_v22, %v2693_v5  ;;  %v3689_v59 = vstv %s2243_s3  ;;  %v942_v52 = vadd.f32 %v940_v24, %v935_v8  ;;  %v3690_v41 = vstv %s3669_s29  ;;  %s3696_s3 = sld [smem:[#allocation71_spill]] }
 0x168   : > { %v761_v21 = vadd.f32 %v759_v23, %v754_v10  ;;  %v770_v61 = vmul.f32 %v3689_v59, %v2723_v45  ;;  %v932_v56 = vmul.f32 %v3690_v41, %v2614_v34  ;;  %v668_v37 = vadd.f32 %v666_v28, %v663_v3 }
 0x169   : > { %v3692_v35 = vrot.slane %v2296_v20, %v2051_v12  ;;  %v929_v43 = vadd.f32 %v2842_v7, %v922_v58  ;;  %v3694_v0 = vstv %s3672_s0  ;;  %v3695_v47 = vstv %s2262_s2  ;;  %s3701_s2 = sld [smem:[#allocation74_spill]] }
 0x16a   : > { %v939_v32 = vmul.f32 %v3694_v0, %v2636_v57  ;;  %v766_v23 = vadd.f32 %v764_v42, %v761_v21  ;;  %v775_v24 = vmul.f32 %v3695_v47, %v2761_v16  ;;  %v3697_v50 = vstv %s2280_s16  ;;  %670 = vrot.lane.b32.xlu0 %v668_v37, %s1814_s19  ;;  %s1815_s16 = smov 16   ;;  %s3805_s19 = sld [smem:[#allocation26_spill]] }
 0x16b   : > { %v738_v33 = vadd.f32 %v3692_v35, %v721_v15  ;;  %v782_v11 = vmul.f32 %v3697_v50, %v2788_v53  ;;  %v947_v1 = vadd.f32 %v945_v48, %v942_v52  ;;  %v3698_v20 = vrot.slane %v2299_v55, %v2051_v12  ;;  %v3705_v52 = vld [vmem:[#allocation97_spill] sm:$0xff]  ;;  %v3707_v35 = vld [vmem:[#allocation77_spill] sm:$0xff]  ;;  %s1531_s0 = sshll.u32 %s3803_s20, 7 }
 0x16c   : > { %v3699_v28 = vstv %s2282_s8  ;;  %v934_v42 = vadd.f32 %v932_v56, %v929_v43  ;;  %v3700_v39 = vmov %v3687_v54  ;;  %v773_v54 = vadd.f32 %v771_v4, %v766_v23  ;;  %s3724_s8 = sld [smem:[#allocation75_spill]]  ;;  %s3807_s9 = sshll.u32 %s3804_s6, 3 }
 0x16d   : > { %v753_v7 = vadd.f32 %v3698_v20, %v738_v33  ;;  %v787_v10 = vmul.f32 %v3699_v28, %v2818_v40  ;;  %v944_v8 = vmul.f32 %v3700_v39, %v2659_v9  ;;  %v3702_v48 = vrot.slane %v2318_v18, %v2053_v13 }
 0x16e   : > { %v3703_v15 = vstv %s3691_s17  ;;  %v3704_v55 = vstv %s3693_s27  ;;  %v941_v59 = vadd.f32 %v939_v32, %v934_v42  ;;  %v1042_v41 = vadd.f32 %v3705_v52, %v2537_v27 }
 0x16f   : > { %v964_v3 = vadd.f32 %v3702_v48, %v947_v1  ;;  %v984_v22 = vmul.f32 %v3703_v15, %v2649_v44  ;;  %v989_v58 = vmul.f32 %v3704_v55, %v2684_v31  ;;  %v760_v21 = vadd.f32 %v758_v14, %v753_v7 }
 0x170   : > { %v3706_v56 = vstv %s3696_s3  ;;  %v778_v37 = vadd.f32 %v776_v6, %v773_v54  ;;  %v3708_v33 = vrot.slane %v3707_v35, %v2053_v13  ;;  %v3709_v0 = vstv %s2289_s7  ;;  %s3752_s7 = sld [smem:[#allocation50_spill]] }
 0x171   : > { %v1052_v4 = vmul.f32 %v3706_v56, %v2597_v51  ;;  %v996_v23 = vmul.f32 %v3709_v0, %v2716_v49  ;;  %v3710_v47 = vstv %s2320_s23  ;;  %v765_v32 = vadd.f32 %v763_v2, %v760_v21 }
 0x172   : > { %v979_v43 = vadd.f32 %v3708_v33, %v964_v3  ;;  %v1001_v14 = vmul.f32 %v3710_v47, %v2751_v38  ;;  %v946_v50 = vadd.f32 %v944_v8, %v941_v59  ;;  %v1049_v27 = vadd.f32 %v2869_v26, %v1042_v41 }
 0x173   : > { %v3711_v1 = vstv %s3701_s2  ;;  %v785_v6 = vadd.f32 %v783_v36, %v778_v37  ;;  %v3712_v28 = vstv %s2340_s5  ;;  %v3713_v39 = vstv %s2350_s22  ;;  %v3720_v37 = vld [vmem:[#allocation94_spill] sm:$0xff]  ;;  %s3744_s5 = sld [smem:[#allocation48_spill]] }
 0x174   : > { %v1059_v20 = vmul.f32 %v3711_v1, %v2623_v60  ;;  %v986_v7 = vadd.f32 %v984_v22, %v979_v43  ;;  %v1008_v42 = vmul.f32 %v3712_v28, %v2792_v30  ;;  %v1013_v54 = vmul.f32 %v3713_v39, %v2822_v62 }
 0x175   : > { %v772_v48 = vadd.f32 %v770_v61, %v765_v32  ;;  %v3714_v3 = vrot.slane %v2318_v18, %v2051_v12  ;;  %v1054_v26 = vadd.f32 %v1052_v4, %v1049_v27  ;;  %v3715_v8 = vstv %s2291_s15  ;;  %v3719_v4 = vld [vmem:[#allocation91_spill] sm:$0xff]  ;;  %s3106_s15 = sld [smem:[#allocation7 + $0x4a]] }
 0x176   : > { %v1064_v15 = vmul.f32 %v3715_v8, %v2629_v19  ;;  %v790_v36 = vadd.f32 %v788_v63, %v785_v6  ;;  %v991_v22 = vadd.f32 %v989_v58, %v986_v7  ;;  %v3716_v55 = vstv %s3691_s17  ;;  %s280_s17 = scalar_lea.vmem [#allocation11], %s3807_s9 }
 0x177   : > { %v963_v2 = vadd.f32 %v3714_v3, %v946_v50  ;;  %v983_v21 = vmul.f32 %v3716_v55, %v2667_v17  ;;  %v3717_v59 = vstv %s3693_s27  ;;  %v777_v61 = vadd.f32 %v775_v24, %v772_v48  ;;  %s1312_s27 = sshll.u32 %s280_s17, 4  ;;  %s3258_s27 = int_to_ptr.vmem [resolvable:$true] %s1312_s27 }
 0x178   : > { %v988_v52 = vmul.f32 %v3717_v59, %v2693_v5  ;;  %v3718_v18 = vrot.slane %v3707_v35, %v2051_v12  ;;  %v1061_v56 = vadd.f32 %v1059_v20, %v1054_v26  ;;  %v1041_v33 = vadd.f32 %v3720_v37, %v3719_v4  ;;  %793 = vrot.lane.b32.xlu1 %v790_v36, %s1815_s16 }
 0x179   : > { %v998_v63 = vadd.f32 %v996_v23, %v991_v22  ;;  %v3721_v58 = vmov %v3709_v0  ;;  %v3722_v0 = vstv %s3696_s3  ;;  %v3723_v47 = vmov %v3711_v1 }
 0x17a   : > { %v978_v41 = vadd.f32 %v3718_v18, %v963_v2  ;;  %v995_v43 = vmul.f32 %v3721_v58, %v2723_v45  ;;  %v1051_v24 = vmul.f32 %v3722_v0, %v2614_v34  ;;  %v1058_v35 = vmul.f32 %v3723_v47, %v2636_v57 }
 0x17b   : > { %v784_v32 = vadd.f32 %v782_v11, %v777_v61  ;;  %v1066_v27 = vadd.f32 %v1064_v15, %v1061_v56  ;;  %v1048_v1 = vadd.f32 %v2861_v29, %v1041_v33  ;;  %v1003_v20 = vadd.f32 %v1001_v14, %v998_v63  ;;  %v3729_v11 = vld [vmem:[#allocation78_spill] sm:$0xff]  ;;  %v3737_v56 = vld [vmem:[#allocation99_spill] sm:$0xff] }
 0x17c   : > { %v985_v50 = vadd.f32 %v983_v21, %v978_v41  ;;  %v3725_v23 = vstv %s2320_s23  ;;  %v3726_v7 = vmov %v3712_v28  ;;  %v3727_v39 = vmov %v3715_v8  ;;  %v3736_v41 = vld [vmem:[#allocation93_spill] sm:$0xff]  ;;  %s3761_s23 = sld [smem:[#allocation81_spill]] }
 0x17d   : > { %v1000_v6 = vmul.f32 %v3725_v23, %v2761_v16  ;;  %v1007_v28 = vmul.f32 %v3726_v7, %v2788_v53  ;;  %v1063_v48 = vmul.f32 %v3727_v39, %v2659_v9  ;;  %v789_v3 = vadd.f32 %v787_v10, %v784_v32 }
 0x17e   : > { %v990_v2 = vadd.f32 %v988_v52, %v985_v50  ;;  %v3730_v26 = vrot.slane %v3729_v11, %v2053_v13  ;;  %v1053_v29 = vadd.f32 %v1051_v24, %v1048_v1  ;;  %v1010_v14 = vadd.f32 %v1008_v42, %v1003_v20  ;;  %v3734_v52 = vld [vmem:[#allocation79_spill] sm:$0xff] }
 0x17f   : > { %v3731_v15 = vstv %s2350_s22  ;;  %v3732_v22 = vstv %s3724_s8  ;;  %v3733_v21 = vstv %s2322_s10  ;;  %791 = vrot.lane.b32.xlu0 %v789_v3, %s1815_s16  ;;  %v3735_v61 = vrot.slane %v3734_v52, %v2053_v13  ;;  %s1816_s22 = smov 112   ;;  %s3757_s10 = sld [smem:[#allocation80_spill]] }
 0x180   : > { %v1083_v8 = vadd.f32 %v3730_v26, %v1066_v27  ;;  %v1012_v36 = vmul.f32 %v3731_v15, %v2818_v40  ;;  %v1103_v55 = vmul.f32 %v3732_v22, %v2649_v44  ;;  %v1108_v59 = vmul.f32 %v3733_v21, %v2684_v31  ;;  %v3749_v15 = vld [vmem:[#allocation92_spill] sm:$0xff]  ;;  %s3808_s16 = sld [smem:[#allocation104_spill]] }
 0x181   : > { %v997_v10 = vadd.f32 %v995_v43, %v990_v2  ;;  %v1060_v42 = vadd.f32 %v1058_v35, %v1053_v29  ;;  %v1161_v4 = vadd.f32 %v3737_v56, %v3736_v41  ;;  %v1015_v37 = vadd.f32 %v1013_v54, %v1010_v14 }
 0x182   : > { %v1098_v18 = vadd.f32 %v3735_v61, %v1083_v8  ;;  %v3738_v33 = vstv %s2353_s25  ;;  %v3739_v58 = vstv %s3728_s13  ;;  %v3740_v24 = vstv %s2330_s30  ;;  %s3763_s30 = sld [smem:[#allocation83_spill]]  ;;  %s1298_s13 = scalar_lea.sflag [#allocation5], %s3804_s6 }
 0x183   : > { %v1115_v63 = vmul.f32 %v3738_v33, %v2716_v49  ;;  %v1171_v0 = vmul.f32 %v3739_v58, %v2597_v51  ;;  %v1178_v43 = vmul.f32 %v3740_v24, %v2623_v60  ;;  %v1002_v47 = vadd.f32 %v1000_v6, %v997_v10  ;;  %1018 = vrot.lane.b32.xlu1 %v1015_v37, %s1816_s22 }
 0x184   : > { %v1105_v32 = vadd.f32 %v1103_v55, %v1098_v18  ;;  %v1065_v50 = vadd.f32 %v1063_v48, %v1060_v42  ;;  %v1168_v35 = vadd.f32 %v2883_v46, %v1161_v4  ;;  %v3741_v27 = vstv %s3652_s4  ;;  %s3788_s4 = sld [smem:[#allocation85_spill]] }
 0x185   : > { %v1165_v54 = vmul.f32 %v3741_v27, %v2513_v25  ;;  %v3742_v1 = vstv %s2362_s21  ;;  %v3743_v23 = vstv %s2379_s12  ;;  %v3745_v39 = vstv %s2364_s24  ;;  %s3770_s24 = sld [smem:[#allocation87_spill]] }
 0x186   : > { %v1120_v20 = vmul.f32 %v3742_v1, %v2751_v38  ;;  %v1127_v7 = vmul.f32 %v3743_v23, %v2792_v30  ;;  %v1183_v6 = vmul.f32 %v3745_v39, %v2629_v19  ;;  %v1009_v3 = vadd.f32 %v1007_v28, %v1002_v47  ;;  %s3256_s8 = scalar_lea.hbm %s3808_s16, %s1531_s0 }
 0x187   : > { %v1110_v48 = vadd.f32 %v1108_v59, %v1105_v32  ;;  %v3746_v46 = vrot.slane %v3729_v11, %v2051_v12  ;;  %v1173_v2 = vadd.f32 %v1171_v0, %v1168_v35  ;;  %v3747_v26 = vmov %v3732_v22  ;;  %v3750_v22 = vld [vmem:[#allocation98_spill] sm:$0xff] }
 0x188   : > { %v1102_v8 = vmul.f32 %v3747_v26, %v2667_v17  ;;  %v3748_v29 = vmov %v3733_v21  ;;  %v1160_v55 = vadd.f32 %v3750_v22, %v3749_v15  ;;  %v3751_v21 = vmov %v3739_v58 }
 0x189   : > { %v1082_v25 = vadd.f32 %v3746_v46, %v1065_v50  ;;  %v1107_v14 = vmul.f32 %v3748_v29, %v2693_v5  ;;  %v1170_v28 = vmul.f32 %v3751_v21, %v2614_v34  ;;  %v1014_v11 = vadd.f32 %v1012_v36, %v1009_v3  ;;  %v3772_v29 = vld [vmem:[#allocation86_spill] sm:$0xff] }
 0x18a   : > { %v1117_v59 = vadd.f32 %v1115_v63, %v1110_v48  ;;  %v3753_v10 = vrot.slane %v3734_v52, %v2051_v12  ;;  %v1180_v18 = vadd.f32 %v1178_v43, %v1173_v2  ;;  %v3754_v42 = vstv %s3744_s5  ;;  %s1819_s5 = smov [#allocation11]  }
 0x18b   : > { %v826_v41 = vmul.f32 %v3754_v42, %v2614_v34  ;;  %v3755_v56 = vstv %s2381_s26  ;;  %v1167_v37 = vadd.f32 %v1165_v54, %v1160_v55  ;;  %v3756_v33 = vmov %v3740_v24  ;;  %1016 = vrot.lane.b32.xlu0 %v1014_v11, %s1816_s22  ;;  %s3176_s26 = sld [smem:[#allocation7 + $0x4b]]  ;;  %s1727_s22 = scalar_lea.vmem %s3258_s27, 128 }
 0x18c   : > { %v1097_v61 = vadd.f32 %v3753_v10, %v1082_v25  ;;  %v1132_v4 = vmul.f32 %v3755_v56, %v2822_v62  ;;  %v1177_v36 = vmul.f32 %v3756_v33, %v2636_v57  ;;  %v1122_v63 = vadd.f32 %v1120_v20, %v1117_v59  ;;  %p1728_p7 = scmp.ne.s32.totalorder %s3258_s27, %s1727_s22 }
 0x18d   : > { %v3758_v52 = vstv %s2353_s25  ;;  %v1185_v24 = vadd.f32 %v1183_v6, %v1180_v18  ;;  %v3759_v43 = vmov %v3754_v42  ;;  %v3760_v47 = vstv %s3752_s7  ;;  %s3147_s25 = sld [smem:[#allocation7 + $0x1a]]  ;;  %v3778_v42 = vld [vmem:[#allocation95_spill] sm:$0xff]  ;;  %s1731_s7 = sshll.u32 %s1819_s5, 4  ;;  %s1732_s7 = int_to_ptr.vmem [resolvable:$false] %s1731_s7 }
 0x18e   : > { %v1104_v58 = vadd.f32 %v1102_v8, %v1097_v61  ;;  %v1114_v0 = vmul.f32 %v3758_v52, %v2723_v45  ;;  %v827_v34 = vmul.f32 %v3759_v43, %v2597_v51  ;;  %v833_v32 = vmul.f32 %v3760_v47, %v2636_v57  ;;  %p1729_p10 = pnand %p1728_p7, %p1984_p12  ;;  %p1734_p3 = scmp.lt.s32.totalorder %s3258_s27, %s1732_s7 }
 0x18f   : > { %v1172_v50 = vadd.f32 %v1170_v28, %v1167_v37  ;;  %v3762_v35 = vmov %v3745_v39  ;;  %v1129_v54 = vadd.f32 %v1127_v7, %v1122_v63  ;;  %v3764_v20 = vstv %s2362_s21  ;;  %v3765_v39 = vld [vmem:[#allocation84_spill] sm:$0xff]  ;;  %s3771_s21 = sld [smem:[#allocation82_spill]] }
 0x190   : > { %v1182_v27 = vmul.f32 %v3762_v35, %v2659_v9  ;;  %v1109_v1 = vadd.f32 %v1107_v14, %v1104_v58  ;;  %v1119_v23 = vmul.f32 %v3764_v20, %v2761_v16  ;;  %v3766_v6 = vrot.slane %v3765_v39, %v2053_v13  ;;  %p1730_p0 = pneg %p1729_p10 }
 0x191   : > { %v3767_v3 = vmov %v3760_v47  ;;  %v3768_v57 = vstv %s2379_s12  ;;  %v3769_v25 = vstv %s3757_s10  ;;  %v1179_v26 = vadd.f32 %v1177_v36, %v1172_v50  ;;  %s3777_s12 = sld [smem:[#allocation88_spill]] }
 0x192   : > { %v1202_v51 = vadd.f32 %v3766_v6, %v1185_v24  ;;  %v834_v48 = vmul.f32 %v3767_v3, %v2623_v60  ;;  %v1126_v46 = vmul.f32 %v3768_v57, %v2788_v53  ;;  %v1222_v2 = vmul.f32 %v3769_v25, %v2649_v44 }
 0x193   : > { %v1134_v7 = vadd.f32 %v1132_v4, %v1129_v54  ;;  %v1116_v8 = vadd.f32 %v1114_v0, %v1109_v1  ;;  %v3773_v14 = vrot.slane %v3772_v29, %v2053_v13  ;;  %v3774_v60 = vstv %s3761_s23  ;;  %v3779_v4 = vld [vmem:[#allocation96_spill] sm:$0xff] }
 0x194   : > { %v1227_v22 = vmul.f32 %v3774_v60, %v2684_v31  ;;  %v3775_v55 = vmov %v3755_v56  ;;  %v3776_v28 = vstv %s3763_s30  ;;  %v1184_v59 = vadd.f32 %v1182_v27, %v1179_v26 }
 0x195   : > { %v1217_v15 = vadd.f32 %v3773_v14, %v1202_v51  ;;  %v1131_v21 = vmul.f32 %v3775_v55, %v2818_v40  ;;  %v1234_v11 = vmul.f32 %v3776_v28, %v2716_v49  ;;  %v881_v10 = vstv %s3106_s15  ;;  %1137 = vrot.lane.b32.xlu1 %v1134_v7, %s1817_s11  ;;  %s1733_s15 = scalar_lea.vmem %s1732_s7, 256 }
 0x196   : > { %v1121_v61 = vadd.f32 %v1119_v23, %v1116_v8  ;;  %v828_v56 = vadd.f32 %v826_v41, %v3778_v42  ;;  %v829_v37 = vadd.f32 %v827_v34, %v3779_v4  ;;  %v3780_v33 = vstv %s3770_s24  ;;  %v3797_v42 = vld [vmem:[#allocation90_spill] sm:$0xff]  ;;  %p1735_p1 = scmp.lt.s32.totalorder %s1733_s15, %s1727_s22 }
 0x197   : > { %v1224_v18 = vadd.f32 %v1222_v2, %v1217_v15  ;;  %v1239_v36 = vmul.f32 %v3780_v33, %v2751_v38  ;;  %v3781_v63 = vrot.slane %v3765_v39, %v2051_v12  ;;  %v3782_v52 = vstv %s3771_s21 }
 0x198   : > { %v838_v0 = vmul.f32 %v3782_v52, %v2659_v9  ;;  %v3783_v24 = vmov %v3782_v52  ;;  %v1128_v41 = vadd.f32 %v1126_v46, %v1121_v61  ;;  %v835_v47 = vadd.f32 %v833_v32, %v828_v56  ;;  %p1736_p4 = por %p1735_p1, %p1734_p3 }
 0x199   : > { %v1201_v58 = vadd.f32 %v3781_v63, %v1184_v59  ;;  %v839_v43 = vmul.f32 %v3783_v24, %v2629_v19  ;;  %v1229_v34 = vadd.f32 %v1227_v22, %v1224_v18  ;;  %v836_v50 = vadd.f32 %v834_v48, %v829_v37 }
 0x19a   : > { %v3784_v35 = vstv %s3777_s12  ;;  %v3785_v54 = vrot.slane %v3772_v29, %v2051_v12  ;;  %v3786_v1 = vmov %v3769_v25  ;;  %v3787_v19 = vmov %v3774_v60  ;;  %v3792_v29 = vld [vmem:[#allocation89_spill] sm:$0xff]  ;;  %p1737_p13 = pnand %p1736_p4, %p1730_p0 }
 0x19b   : > { %v1246_v27 = vmul.f32 %v3784_v35, %v2792_v30  ;;  %v1221_v20 = vmul.f32 %v3786_v1, %v2667_v17  ;;  %v1226_v23 = vmul.f32 %v3787_v19, %v2693_v5  ;;  %v1133_v39 = vadd.f32 %v1131_v21, %v1128_v41 }
 0x19c   : > { %v1216_v9 = vadd.f32 %v3785_v54, %v1201_v58  ;;  %v1236_v32 = vadd.f32 %v1234_v11, %v1229_v34  ;;  %v840_v6 = vadd.f32 %v838_v0, %v835_v47  ;;  %v841_v51 = vadd.f32 %v839_v43, %v836_v50 }
 0x19d   : > { %v3789_v3 = vstv %s2431_s1  ;;  %v3790_v46 = vmov %v3776_v28  ;;  %v888_v2 = vstv %s3147_s25  ;;  %1135 = vrot.lane.b32.xlu0 %v1133_v39, %s1817_s11  ;;  %v3791_v7 = vmov %v3780_v33  ;;  %s1269_s1 = sld [smem:[#allocation2]] }
 0x19e   : > { %v1251_v48 = vmul.f32 %v3789_v3, %v2822_v62  ;;  %v1223_v57 = vadd.f32 %v1221_v20, %v1216_v9  ;;  %v1233_v25 = vmul.f32 %v3790_v46, %v2723_v45  ;;  %v1241_v26 = vadd.f32 %v1239_v36, %v1236_v32 }
 0x19f   : > { %v1238_v8 = vmul.f32 %v3791_v7, %v2761_v16  ;;  %v3793_v14 = vrot.slane %v3792_v29, %v2051_v12  ;;  %v3794_v60 = vrot.slane %v3792_v29, %v2053_v13  ;;  %v3795_v21 = vstv %s3788_s4 }
 0x1a0   : > { %v1228_v55 = vadd.f32 %v1226_v23, %v1223_v57  ;;  %v877_v28 = vmul.f32 %v3795_v21, %v2667_v17  ;;  %v3796_v11 = vmov %v3795_v21  ;;  %v882_v61 = vmul.f32 %v881_v10, %v2693_v5 }
 0x1a1   : > { %v857_v15 = vadd.f32 %v3793_v14, %v840_v6  ;;  %v858_v22 = vadd.f32 %v3794_v60, %v841_v51  ;;  %v878_v59 = vmul.f32 %v3796_v11, %v2649_v44  ;;  %v1248_v18 = vadd.f32 %v1246_v27, %v1241_v26  ;;  %v302_v26 = vld [vmem:[#allocation10 + $0x8] sm:$0x7f] }
 0x1a2   : > { %v3798_v56 = vrot.slane %v3797_v42, %v2051_v12  ;;  %v3799_v37 = vrot.slane %v3797_v42, %v2053_v13  ;;  %v883_v36 = vmul.f32 %v881_v10, %v2684_v31  ;;  %v1235_v63 = vadd.f32 %v1233_v25, %v1228_v55  ;;  %v3802_v25 = vld [vmem:[#allocation57_spill] sm:$0xff] }
 0x1a3   : > { %v3800_v17 = vmov %v3784_v35  ;;  %v889_v44 = vmul.f32 %v888_v2, %v2723_v45  ;;  %v893_v52 = vstv %s3176_s26  ;;  %v1253_v5 = vadd.f32 %v1251_v48, %v1248_v18 }
 0x1a4   : > { %v872_v4 = vadd.f32 %v3798_v56, %v857_v15  ;;  %v873_v33 = vadd.f32 %v3799_v37, %v858_v22  ;;  %v1245_v58 = vmul.f32 %v3800_v17, %v2788_v53  ;;  %v890_v43 = vmul.f32 %v888_v2, %v2716_v49  ;;  %v301_v2 = vld [vmem:[#allocation10] sm:$0x7f] }
 0x1a5   : > { %v1240_v41 = vadd.f32 %v1238_v8, %v1235_v63  ;;  %v3801_v34 = vmov %v3789_v3  ;;  %v900_v47 = vstv %s3190_s14  ;;  %1256 = vrot.lane.b32.xlu1 %v1253_v5, %s1818_s28  ;;  %v894_v50 = vmul.f32 %v893_v52, %v2761_v16 }
 0x1a6   : > { %v879_v0 = vadd.f32 %v877_v28, %v872_v4  ;;  %v880_v24 = vadd.f32 %v878_v59, %v873_v33  ;;  %v1250_v13 = vmul.f32 %v3801_v34, %v2818_v40  ;;  %v895_v45 = vmul.f32 %v893_v52, %v2751_v38 }
 0x1a7   : > { %v1247_v35 = vadd.f32 %v1245_v58, %v1240_v41  ;;  %v905_v27 = vstv %s3199_s18  ;;  %v901_v1 = vmul.f32 %v900_v47, %v2788_v53  ;;  %v902_v49 = vmul.f32 %v900_v47, %v2792_v30 }
 0x1a8   : > { %v884_v31 = vadd.f32 %v882_v61, %v879_v0  ;;  %v885_v10 = vadd.f32 %v883_v36, %v880_v24  ;;  %v906_v39 = vmul.f32 %v905_v27, %v2818_v40  ;;  %v907_v32 = vmul.f32 %v905_v27, %v2822_v62 }
 0x1a9   : > { %v1252_v20 = vadd.f32 %v1250_v13, %v1247_v35  ;;  %vm674_vm6 = vcmp.lt.s32.totalorder %v3802_v25, 32  ;;  %vm559_vm7 = vcmp.lt.s32.totalorder %v3802_v25, 48  ;;  %v679_v40 = vrot.slane %v301_v2, 1 }
 0x1aa   : > { %v891_v54 = vadd.f32 %v889_v44, %v884_v31  ;;  %v892_v9 = vadd.f32 %v890_v43, %v885_v10  ;;  %v680_v7 = vrot.slane %v302_v26, 1  ;;  %vm795_vm8 = vcmp.lt.s32.totalorder %v3802_v25, 16 }
 0x1ab   : > { %1254 = vrot.lane.b32.xlu0 %v1252_v20, %s1818_s28  ;;  %v798_v29 = vrot.slane %v301_v2, 2  ;;  %v799_v14 = vrot.slane %v302_v26, 2  ;;  %vm1020_vm9 = vcmp.lt.s32.totalorder %v3802_v25, 112  ;;  %v1023_v33 = vrot.slane %v301_v2, 4 }
 0x1ac   : > { %v896_v19 = vadd.f32 %v894_v50, %v891_v54  ;;  %v897_v23 = vadd.f32 %v895_v45, %v892_v9  ;;  %v1024_v17 = vrot.slane %v302_v26, 4  ;;  %vm1139_vm10 = vcmp.lt.s32.totalorder %v3802_v25, 96 }
 0x1ad   : > { %v1142_v0 = vrot.slane %v301_v2, 5  ;;  %v1143_v24 = vrot.slane %v302_v26, 5  ;;  %vm1258_vm11 = vcmp.lt.s32.totalorder %v3802_v25, 80  ;;  %v1261_v35 = vrot.slane %v301_v2, 6 }
 0x1ae   : > { %v903_v6 = vadd.f32 %v901_v1, %v896_v19  ;;  %v904_v16 = vadd.f32 %v902_v49, %v897_v23  ;;  %v1262_v27 = vrot.slane %v302_v26, 6 }
 0x1b0   : > { %v908_v51 = vadd.f32 %v906_v39, %v903_v6  ;;  %v909_v38 = vadd.f32 %v907_v32, %v904_v16  ;;  %v1270_v6 = vstv %s1269_s1 }
 0x1c5   : > { %v558_v3 = vpop.permute.xlu1 %557 }
 0x1c6   : > { %v556_v48 = vpop.permute.xlu0 %555 }
 0x1c7   : > { %v560_v15 = vsel %vm559_vm7, %v556_v48, %v558_v3  ;;  %v561_v60 = vsel %vm559_vm7, %v558_v3, %v556_v48 }
 0x1c8   : > { %v562_v61 = vmul.f32 %v561_v60, %v301_v2  ;;  %v563_v18 = vmul.f32 %v560_v15, %v302_v26 }
 0x1cc   : > { %v673_v57 = vpop.permute.xlu1 %672 }
 0x1dc   : > { %v671_v46 = vpop.permute.xlu0 %670 }
 0x1dd   : > { %v675_v62 = vsel %vm674_vm6, %v671_v46, %v673_v57  ;;  %v676_v8 = vsel %vm674_vm6, %v673_v57, %v671_v46 }
 0x1de   : > { %v683_v21 = vmul.f32 %v679_v40, %v676_v8  ;;  %v684_v28 = vmul.f32 %v680_v7, %v675_v62 }
 0x1e0   : > { %v685_v4 = vadd.f32 %v683_v21, %v562_v61  ;;  %v686_v37 = vadd.f32 %v684_v28, %v563_v18 }
 0x1ea   : > { %v794_v53 = vpop.permute.xlu1 %793 }
 0x1f1   : > { %v792_v30 = vpop.permute.xlu0 %791 }
 0x1f2   : > { %v796_v22 = vsel %vm795_vm8, %v792_v30, %v794_v53  ;;  %v797_v55 = vsel %vm795_vm8, %v794_v53, %v792_v30 }
 0x1f3   : > { %v802_v42 = vmul.f32 %v798_v29, %v797_v55  ;;  %v803_v56 = vmul.f32 %v799_v14, %v796_v22  ;;  %v1625_v14 = vld [vmem:[%s3805_s19] sm:$0xff] }
 0x1f5   : > { %v1019_v11 = vpop.permute.xlu1 %1018  ;;  %v804_v36 = vadd.f32 %v802_v42, %v685_v4  ;;  %v805_v63 = vadd.f32 %v803_v56, %v686_v37 }
 0x1f7   : > { %v910_v34 = vadd.f32 %v908_v51, %v804_v36  ;;  %v911_v13 = vadd.f32 %v909_v38, %v805_v63 }
 0x1fd   : > { %v1017_v59 = vpop.permute.xlu0 %1016 }
 0x1fe   : > { %v1021_v52 = vsel %vm1020_vm9, %v1017_v59, %v1019_v11  ;;  %v1022_v5 = vsel %vm1020_vm9, %v1019_v11, %v1017_v59 }
 0x1ff   : > { %v1027_v47 = vmul.f32 %v1023_v33, %v1021_v52  ;;  %v1028_v31 = vmul.f32 %v1024_v17, %v1022_v5 }
 0x201   : > { %v1029_v54 = vadd.f32 %v1027_v47, %v910_v34  ;;  %v1030_v9 = vadd.f32 %v1028_v31, %v911_v13 }
 0x207   : > { %v1138_v58 = vpop.permute.xlu1 %1137 }
 0x20f   : > { %v1136_v44 = vpop.permute.xlu0 %1135 }
 0x210   : > { %v1140_v43 = vsel %vm1139_vm10, %v1136_v44, %v1138_v58  ;;  %v1141_v41 = vsel %vm1139_vm10, %v1138_v58, %v1136_v44 }
 0x211   : > { %v1146_v10 = vmul.f32 %v1142_v0, %v1140_v43  ;;  %v1147_v50 = vmul.f32 %v1143_v24, %v1141_v41 }
 0x213   : > { %v1148_v19 = vadd.f32 %v1146_v10, %v1029_v54  ;;  %v1149_v23 = vadd.f32 %v1147_v50, %v1030_v9 }
 0x217   : > { %v1257_v45 = vpop.permute.xlu1 %1256 }
 0x21d   : > { %v1255_v1 = vpop.permute.xlu0 %1254 }
 0x21e   : > { %v1259_v49 = vsel %vm1258_vm11, %v1255_v1, %v1257_v45  ;;  %v1260_v20 = vsel %vm1258_vm11, %v1257_v45, %v1255_v1 }
 0x21f   : > { %v1265_v39 = vmul.f32 %v1261_v35, %v1259_v49  ;;  %v1266_v32 = vmul.f32 %v1262_v27, %v1260_v20 }
 0x221   : > { %v1267_v16 = vadd.f32 %v1265_v39, %v1148_v19  ;;  %v1268_v51 = vadd.f32 %v1266_v32, %v1149_v23 }
 0x223   : > { %v1271_v38 = vadd.f32 %v1270_v6, %v1267_v16  ;;  %v1272_v3 = vadd.f32 %v1270_v6, %v1268_v51 }
 0x225   : > { %v1273_v48 = vmax.f32 %v1271_v38, 0.0  ;;  %v1274_v57 = vmax.f32 %v1272_v3, 0.0 }
 0x227   : > { %v1275_v46 = vmul.f32 0.5, %v1273_v48  ;;  %v1276_v25 = vmul.f32 0.5, %v1274_v57 }
 0x229   : > { %1621 = vtanh.f32 %v1275_v46 }
 0x22a   : > { %1623 = vtanh.f32 %v1276_v25 }
 0x233   : > { %v1622_v53 = vpop.eup %1621 }
 0x234   : > { %v1624_v30 = vpop.eup %1623  ;;  %v1279_v2 = vadd.f32 1.0, %v1622_v53 }
 0x235   : > { %v1280_v26 = vadd.f32 1.0, %v1624_v30 }
 0x236   : > { %v1281_v40 = vmul.f32 0.5, %v1279_v2 }
 0x237   : > { %v1282_v7 = vmul.f32 0.5, %v1280_v26 }
 0x238   : > { %v1286_v62 = vrot.slane %v1281_v40, %v2051_v12 }
 0x239   : > { %v1290_v8 = vrot.slane %v1282_v7, %v2051_v12 }
 0x23b   : > { %v1293_v29 = vcombine.low %v1286_v62, %v1290_v8 }
 0x23d   : > { %v1295_v15 = vmul.f32 %v1625_v14, %v1293_v29 }
 0x23f   : > { %1296 = vst [vmem:[%s280_s17] sm:$0xff] %v1295_v15 }
 0x240   : > { %1740 = shalt.err (!%p1737_p13)
}
 0x241   : > { %s1741_s10 = scalar_lea.hbm %s3256_s8, 128  ;;  %s1745_s24 = scalar_lea.hbm %s3808_s16, 256 }
 0x242   : > { %p1742_p2 = scmp.ne.s32.totalorder %s3256_s8, %s1741_s10  ;;  %p1746_p6 = scmp.lt.u32.totalorder %s3256_s8, %s3808_s16 }
 0x243   : > { %p1747_p8 = scmp.lt.u32.totalorder %s1745_s24, %s1741_s10  ;;  %p1749_p7 = scmp.lt.u32.totalorder %s1741_s10, %s3256_s8 }
 0x244   : > { %p1743_p9 = pnand %p1742_p2, %p1984_p12 }
 0x245   : > { %p1748_p5 = por %p1747_p8, %p1746_p6 }
 0x246   : > { %p1744_p11 = pneg %p1743_p9 }
 0x247   : > { %p1750_p10 = por %p1749_p7, %p1748_p5 }
 0x249   : > { %p1751_p0 = pnand %p1750_p10, %p1744_p11 }
 0x24b   : > { %1754 = shalt.err (!%p1751_p0)
}
 0x24c   : > { %1546 = dma.vmem_to_hbm [thread:$0]  (%p1984_p12), %s3258_s27, 128, %s3256_s8, %s1298_s13  }
 0x24d PF: > { %s3809_s12 = sld [smem:[#allocation16_spill]]  ;;  %s3810_s11 = sld [smem:[#allocation21_spill]] }
 0x24e   : > { %s3811_s26 = sld [smem:[#allocation19_spill]] }
 0x253   : > { %s1324_s14 = sand.u32 1, %s3809_s12   ;;  %p3812_p3 = scmp.ne.s32.totalorder %s3810_s11, 0 }
 0x254   : > { %p3813_p1 = scmp.ge.s32.totalorder %s3811_s26, 2  ;;  %s1325_s4 = scalar_lea.sflag [#allocation5], %s1324_s14 }
 0x256   : > { %p1563_p4 = pnand %p3813_p1, %p3812_p3 }
 0x258   : > { %1784 = dma.done.wait (!%p1563_p4), %s1325_s4, 128  }
 0x259   : > { %1786 = vsyncadd (!%p1563_p4), %s1325_s4, 4294967168  ;;  %s3814_s23 = sld [smem:[#allocation22_spill]]  ;;  %s3815_s20 = sld [smem:[#allocation17_spill]] }
 0x25a   : > { %s3816_s21 = sld [smem:[#allocation18_spill]]  ;;  %s3817_s22 = sld [smem:[#allocation23_spill]] }
 0x25f   : > { %p21_p13 = scmp.ge.s32.totalorder %s3814_s23, 4  }
 0x261   :  { %23 = sbr.rel (!%p21_p13) target bundleno = 14 (0xe), region = 98 }
 0x268   :  { %1330 = vsyncpa [#allocation4], 1 }
 0x269   :  { %1332 = vsyncpa [#allocation4 + $0x1], 1 }
 0x26a   :  { %1333 = vsyncpa [#allocation9], 1 }
 0x26b   :  { %1334 = vsyncpa [#allocation5], 1 }
 0x26c   :  { %1336 = vsyncpa [#allocation5 + $0x1], 1 }
 0x26d   :  { %1337 = vsyncpa [#allocation6], 1 }
 0x26e   :  { %1339 = vsyncpa [#allocation6 + $0x1], 1 }

</bundles_post_ra>
